<compile_context>
chip_gen: v5e
topology: v5e:2x2
jax: 0.10.0
libtpu: 0.0.40
codegen_flags: <defaults>
</compile_context>

<pallas_src>
import functools

import jax
import jax.numpy as jnp
from jax.experimental import pallas as pl
from jax.experimental.pallas import tpu as pltpu


def _round_up(x: int, m: int) -> int:
    return ((x + m - 1) // m) * m


def _device_kind() -> str:
    try:
        return jax.devices()[0].device_kind.lower()
    except Exception:
        return ""


def _default_num_cores() -> int:
    # Two TensorCores per chip only on v7x; v5e/v6e are single-TC.
    return 2 if "v7" in _device_kind() else 1


def _vmem_limit_bytes() -> int:
    """Scoped-VMEM limit with headroom, clamped to the per-TC capacity."""
    cap = None
    try:
        info = pltpu.get_tpu_info()
        cap = getattr(info, "vmem_capacity_bytes", None)
    except Exception:
        cap = None
    if not cap:
        cap = 64 * 1024 * 1024                     # conservative (v7x per-TC)
    if "v7" in _device_kind():
        cap = min(int(cap), 64 * 1024 * 1024)      # per-TC, not whole-chip
    return min(int(cap) * 3 // 4, 100 * 1024 * 1024)


def _plan_tiles(rows_per_core: int, V: int, in_itemsize: int,
                vmem_limit: int, vocab_chunks=None):
    """Pick (tile_rows, tile_v, n_v_chunks) that fit the VMEM budget.

    Per-row live bytes for a vocab-chunk width tv:
      2 * tv * itemsize   double-buffered logits tile
      2 * tv * 4          live f32 temporaries (exp / select passes)
      ~4 KiB              (tile_rows, 1) scratch, accumulators and target tile,
                          each lane-padded to 128 lanes of f32
    """
    row_align = {4: 8, 2: 16, 1: 32}.get(in_itemsize, 8)
    budget = int(vmem_limit * 0.6)                 # headroom for everything else
    fixed_per_row = 4 * 1024

    def per_row(tv):
        return 2 * tv * in_itemsize + 2 * tv * 4 + fixed_per_row

    max_rows_wanted = _round_up(max(rows_per_core, 1), row_align)

    if vocab_chunks is not None and int(vocab_chunks) > 1:
        tile_v = max(128, _round_up(pl.cdiv(V, int(vocab_chunks)), 128))
        nv = pl.cdiv(V, tile_v)
    elif budget // per_row(V) >= row_align:
        tile_v, nv = V, 1                          # single full-V chunk
    else:
        # vocab split: widest 128-multiple chunk that still allows an
        # aligned row tile.
        tv = (budget // row_align - fixed_per_row) // (2 * in_itemsize + 8)
        tile_v = max(128, (tv // 128) * 128)
        nv = pl.cdiv(V, tile_v)

    tile_rows = budget // per_row(tile_v)
    tile_rows = min(tile_rows, 1024, max_rows_wanted)
    tile_rows = max(row_align, (tile_rows // row_align) * row_align)
    return int(tile_rows), int(tile_v), int(nv)


def _ls_ce_kernel(x_ref, tgt_ref, nll_ref, sm_ref,
                  m_sc, l_sc, sx_sc, pk_sc, *,
                  n_classes: int, n_rows: int, tile_rows: int, tile_v: int,
                  blocks_per_core: int, n_v_chunks: int, v_total: int):
    p = pl.program_id(0)   # parallel axis (TensorCore shard)
    i = pl.program_id(1)   # arbitrary axis (row blocks, accumulates outputs)
    j = pl.program_id(2)   # arbitrary axis (vocab chunks, online logsumexp)

    @pl.when((i == 0) & (j == 0))
    def _():
        nll_ref[...] = jnp.zeros_like(nll_ref)
        sm_ref[...] = jnp.zeros_like(sm_ref)

    @pl.when(j == 0)
    def _():
        m_sc[...] = jnp.full_like(m_sc, -jnp.inf)
        l_sc[...] = jnp.zeros_like(l_sc)
        sx_sc[...] = jnp.zeros_like(sx_sc)
        pk_sc[...] = jnp.zeros_like(pk_sc)

    x = x_ref[...]                                  # (tile_rows, tile_v), input dtype
    tgt = tgt_ref[...]                              # (tile_rows, 1) int32

    # Cheap reductions stay in the packed input dtype; accumulate in f32.
    c_max = jnp.max(x, axis=-1, keepdims=True).astype(jnp.float32)      # (tr, 1)
    sx_sc[...] += jnp.sum(x, axis=-1, keepdims=True, dtype=jnp.float32)

    # Gather x[row, target[row]] via select-reduce; lane iota is (1, tile_v)
    # and broadcasts against the (tile_rows, 1) target (no full-tile iota).
    lane = j * tile_v + jax.lax.broadcasted_iota(jnp.int32, (1, tile_v), 1)
    pk_sc[...] += jnp.sum(jnp.where(lane == tgt, x, 0),
                          axis=-1, keepdims=True, dtype=jnp.float32)

    # Online logsumexp carry (f32 exp / accumulation for accuracy).
    m_new = jnp.maximum(m_sc[...], c_max)
    alpha = jnp.exp(m_sc[...] - m_new)
    chunk_l = jnp.sum(jnp.exp(x.astype(jnp.float32) - m_new),
                      axis=-1, keepdims=True)
    if v_total > n_classes:
        # Padded vocab columns are filled with 0.0 in the wrapper; their exact
        # contribution to chunk_l is pad_cols * exp(0 - m_new) -> subtract it.
        pad_cols = jnp.clip((j + 1) * tile_v - n_classes, 0, tile_v)
        chunk_l = chunk_l - pad_cols.astype(jnp.float32) * jnp.exp(-m_new)
    l_sc[...] = alpha * l_sc[...] + chunk_l
    m_sc[...] = m_new

    @pl.when(j == n_v_chunks - 1)
    def _():
        lse = m_sc[...] + jnp.log(l_sc[...])                              # (tr, 1)
        # Mask rows added by padding so they contribute exactly zero.
        row0 = (p * blocks_per_core + i) * tile_rows
        row_ids = row0 + jax.lax.broadcasted_iota(jnp.int32, (tile_rows, 1), 0)
        valid = row_ids < n_rows
        # nll per row:    lse - x[t]
        # smooth per row: V * lse - sum_v x_v
        nll_ref[...] += jnp.where(valid, lse - pk_sc[...], 0.0)
        sm_ref[...] += jnp.where(valid,
                                 jnp.float32(n_classes) * lse - sx_sc[...], 0.0)


def label_smoothing_cross_entropy(x, target, *, smoothing=0.0,
                                  num_cores=None, stream_dtype=None,
                                  vocab_chunks=None):
    """x: (N, V) float, target: (N,) int.  Returns scalar f32 loss.

    stream_dtype: optionally cast logits (e.g. to bf16) at the call boundary
      to halve HBM traffic on HBM-bound chips; in-kernel math stays f32.
    vocab_chunks: force the vocab-split (online-logsumexp) path; by default it
      is enabled automatically only when a full-V row tile would not fit VMEM.
    """
    N, V = x.shape
    if stream_dtype is not None and x.dtype != jnp.dtype(stream_dtype):
        x = x.astype(stream_dtype)
    in_itemsize = jnp.dtype(x.dtype).itemsize

    vmem_limit = _vmem_limit_bytes()
    P = int(num_cores) if num_cores else _default_num_cores()
    P = max(1, P)
    rows_per_core = pl.cdiv(N, P)
    tile_rows, tile_v, nv = _plan_tiles(rows_per_core, V, in_itemsize,
                                        vmem_limit, vocab_chunks)
    bpc = pl.cdiv(rows_per_core, tile_rows)         # row blocks per core
    n_rows_pad = P * bpc * tile_rows
    v_total = nv * tile_v                            # padded vocab width

    target2d = target.astype(jnp.int32).reshape(N, 1)
    if n_rows_pad != N or v_total != V:
        # Row padding and vocab padding both use 0.0; padded rows are masked
        # inside the kernel, padded columns are corrected in closed form.
        x = jnp.pad(x, ((0, n_rows_pad - N), (0, v_total - V)))
    if n_rows_pad != N:
        target2d = jnp.pad(target2d, ((0, n_rows_pad - N), (0, 0)))

    kernel = functools.partial(
        _ls_ce_kernel, n_classes=int(V), n_rows=int(N),
        tile_rows=int(tile_rows), tile_v=int(tile_v),
        blocks_per_core=int(bpc), n_v_chunks=int(nv), v_total=int(v_total))

    cost = pl.CostEstimate(
        flops=int(7 * n_rows_pad * v_total),
        transcendentals=int(n_rows_pad * v_total),
        bytes_accessed=int(n_rows_pad * v_total * in_itemsize
                           + n_rows_pad * 4 + 2 * P * tile_rows * 4),
    )

    nll_part, sm_part = pl.pallas_call(
        kernel,
        out_shape=(
            jax.ShapeDtypeStruct((P, tile_rows, 1), jnp.float32),
            jax.ShapeDtypeStruct((P, tile_rows, 1), jnp.float32),
        ),
        grid_spec=pltpu.PrefetchScalarGridSpec(
            num_scalar_prefetch=0,
            grid=(P, bpc, nv),
            in_specs=[
                pl.BlockSpec((tile_rows, tile_v),
                             lambda p, i, j: (p * bpc + i, j)),
                pl.BlockSpec((tile_rows, 1),
                             lambda p, i, j: (p * bpc + i, 0)),
            ],
            out_specs=[
                pl.BlockSpec((None, tile_rows, 1), lambda p, i, j: (p, 0, 0)),
                pl.BlockSpec((None, tile_rows, 1), lambda p, i, j: (p, 0, 0)),
            ],
            scratch_shapes=[pltpu.VMEM((tile_rows, 1), jnp.float32)] * 4,
        ),
        compiler_params=pltpu.CompilerParams(
            dimension_semantics=("parallel", "arbitrary", "arbitrary"),
            vmem_limit_bytes=int(vmem_limit)),
        cost_estimate=cost,
    )(x, target2d)

    nll = jnp.sum(nll_part, dtype=jnp.float32)
    sm = jnp.sum(sm_part, dtype=jnp.float32)
    eps_i = smoothing / V
    loss = (1.0 - smoothing) * nll + eps_i * sm
    return loss / jnp.float32(N)


def _reference(x, target, smoothing):
    # pure-JAX reference matching the PyTorch module
    scores = jax.nn.log_softmax(x.astype(jnp.float32), axis=-1)
    nll = -jnp.take_along_axis(scores, target[:, None], axis=-1)
    smooth = -jnp.sum(scores, axis=-1, keepdims=True)
    eps_i = smoothing / x.shape[1]
    loss = (1.0 - smoothing) * jnp.sum(nll) + eps_i * jnp.sum(smooth)
    return loss / x.shape[0]


if __name__ == "__main__":
    key = jax.random.PRNGKey(0)
    kx, kt = jax.random.split(key)

    N, V = 100, 384          # non-multiple batch exercises row padding/masking
    smoothing = 0.1

    x = jax.random.normal(kx, (N, V), dtype=jnp.float32)
    target = jax.random.randint(kt, (N,), 0, V, dtype=jnp.int32)
    ref = _reference(x, target, smoothing)

    # 1) default path (full-V row tiles, caller dtype)
    loss = jax.block_until_ready(
        label_smoothing_cross_entropy(x, target, smoothing=smoothing))
    assert jnp.allclose(loss, ref, rtol=1e-5, atol=1e-4), (loss, ref)

    # 2) vocab-split / online-logsumexp path incl. column padding (V=300 -> 2x256)
    N2, V2 = 64, 300
    x2 = jax.random.normal(kx, (N2, V2), dtype=jnp.float32)
    t2 = jax.random.randint(kt, (N2,), 0, V2, dtype=jnp.int32)
    loss2 = jax.block_until_ready(
        label_smoothing_cross_entropy(x2, t2, smoothing=smoothing,
                                      vocab_chunks=2))
    ref2 = _reference(x2, t2, smoothing)
    assert jnp.allclose(loss2, ref2, rtol=1e-4, atol=1e-4), (loss2, ref2)

    # 3) bf16-streamed logits (halves HBM bytes on v5e/v6e); looser tolerance
    loss3 = jax.block_until_ready(
        label_smoothing_cross_entropy(x, target, smoothing=smoothing,
                                      stream_dtype=jnp.bfloat16))
    assert jnp.allclose(loss3, ref, rtol=3e-2, atol=3e-2), (loss3, ref)

    print("KERNEL_OK")
</pallas_src>

<mosaic_0001>
module attributes {stable_mosaic.version = 11 : i64} {
  func.func @_ls_ce_kernel(%arg0: i32, %arg1: i32, %arg2: i32, %arg3: memref<104x384xf32, #tpu.memory_space<vmem>>, %arg4: memref<104x1xi32, #tpu.memory_space<vmem>>, %arg5: memref<1x104x1xf32, #tpu.memory_space<vmem>>, %arg6: memref<1x104x1xf32, #tpu.memory_space<vmem>>, %arg7: memref<104x1xf32, #tpu.memory_space<vmem>>, %arg8: memref<104x1xf32, #tpu.memory_space<vmem>>, %arg9: memref<104x1xf32, #tpu.memory_space<vmem>>, %arg10: memref<104x1xf32, #tpu.memory_space<vmem>>) attributes {dimension_semantics = [#tpu.dimension_semantics<parallel>, #tpu.dimension_semantics<arbitrary>, #tpu.dimension_semantics<arbitrary>], iteration_bounds = array<i64: 1, 1, 1>, scalar_prefetch = 0 : i64, scratch_operands = 4 : i64, tpu.core_type = #tpu.core_type<tc>, window_params = [{transform_indices = @transform_0, window_bounds = array<i64: 104, 384>}, {transform_indices = @transform_1, window_bounds = array<i64: 104, 1>}, {transform_indices = @transform_2, window_bounds = array<i64: 1, 104, 1>}, {transform_indices = @transform_3, window_bounds = array<i64: 1, 104, 1>}]} {
    %c0_i32 = arith.constant 0 : i32
    %0 = arith.cmpi eq, %arg1, %c0_i32 : i32
    %c0_i32_0 = arith.constant 0 : i32
    %1 = arith.cmpi eq, %arg2, %c0_i32_0 : i32
    %2 = arith.andi %0, %1 : i1
    %3 = arith.extui %2 : i1 to i32
    %c0_i32_1 = arith.constant 0 : i32
    %4 = arith.cmpi ne, %3, %c0_i32_1 : i32
    scf.if %4 {
      %cst_31 = arith.constant 0.000000e+00 : f32
      %50 = vector.broadcast %cst_31 : f32 to vector<104x1xf32>
      %c0_32 = arith.constant 0 : index
      %c0_33 = arith.constant 0 : index
      %c0_34 = arith.constant 0 : index
      %51 = vector.load %arg5[%c0_32, %c0_33, %c0_34] : memref<1x104x1xf32, #tpu.memory_space<vmem>>, vector<1x104x1xf32>
      %52 = vector.shape_cast %51 : vector<1x104x1xf32> to vector<104x1xf32>
      %53 = vector.shape_cast %50 : vector<104x1xf32> to vector<1x104x1xf32>
      tpu.vector_store %arg5[%c0_32, %c0_33, %c0_34], %53 {strides = array<i32>} : memref<1x104x1xf32, #tpu.memory_space<vmem>>, vector<1x104x1xf32>,
      %cst_35 = arith.constant 0.000000e+00 : f32
      %54 = vector.broadcast %cst_35 : f32 to vector<104x1xf32>
      %c0_36 = arith.constant 0 : index
      %c0_37 = arith.constant 0 : index
      %c0_38 = arith.constant 0 : index
      %55 = vector.load %arg6[%c0_36, %c0_37, %c0_38] : memref<1x104x1xf32, #tpu.memory_space<vmem>>, vector<1x104x1xf32>
      %56 = vector.shape_cast %55 : vector<1x104x1xf32> to vector<104x1xf32>
      %57 = vector.shape_cast %54 : vector<104x1xf32> to vector<1x104x1xf32>
      tpu.vector_store %arg6[%c0_36, %c0_37, %c0_38], %57 {strides = array<i32>} : memref<1x104x1xf32, #tpu.memory_space<vmem>>, vector<1x104x1xf32>,
    } else {
    }
    %c0_i32_2 = arith.constant 0 : i32
    %5 = arith.cmpi eq, %arg2, %c0_i32_2 : i32
    %6 = arith.extui %5 : i1 to i32
    %c0_i32_3 = arith.constant 0 : i32
    %7 = arith.cmpi ne, %6, %c0_i32_3 : i32
    scf.if %7 {
      %cst_31 = arith.constant 0xFF800000 : f32
      %50 = vector.broadcast %cst_31 : f32 to vector<104x1xf32>
      %c0_32 = arith.constant 0 : index
      %c0_33 = arith.constant 0 : index
      %51 = vector.load %arg7[%c0_32, %c0_33] : memref<104x1xf32, #tpu.memory_space<vmem>>, vector<104x1xf32>
      tpu.vector_store %arg7[%c0_32, %c0_33], %50 {strides = array<i32>} : memref<104x1xf32, #tpu.memory_space<vmem>>, vector<104x1xf32>,
      %cst_34 = arith.constant 0.000000e+00 : f32
      %52 = vector.broadcast %cst_34 : f32 to vector<104x1xf32>
      %c0_35 = arith.constant 0 : index
      %c0_36 = arith.constant 0 : index
      %53 = vector.load %arg8[%c0_35, %c0_36] : memref<104x1xf32, #tpu.memory_space<vmem>>, vector<104x1xf32>
      tpu.vector_store %arg8[%c0_35, %c0_36], %52 {strides = array<i32>} : memref<104x1xf32, #tpu.memory_space<vmem>>, vector<104x1xf32>,
      %cst_37 = arith.constant 0.000000e+00 : f32
      %54 = vector.broadcast %cst_37 : f32 to vector<104x1xf32>
      %c0_38 = arith.constant 0 : index
      %c0_39 = arith.constant 0 : index
      %55 = vector.load %arg9[%c0_38, %c0_39] : memref<104x1xf32, #tpu.memory_space<vmem>>, vector<104x1xf32>
      tpu.vector_store %arg9[%c0_38, %c0_39], %54 {strides = array<i32>} : memref<104x1xf32, #tpu.memory_space<vmem>>, vector<104x1xf32>,
      %cst_40 = arith.constant 0.000000e+00 : f32
      %56 = vector.broadcast %cst_40 : f32 to vector<104x1xf32>
      %c0_41 = arith.constant 0 : index
      %c0_42 = arith.constant 0 : index
      %57 = vector.load %arg10[%c0_41, %c0_42] : memref<104x1xf32, #tpu.memory_space<vmem>>, vector<104x1xf32>
      tpu.vector_store %arg10[%c0_41, %c0_42], %56 {strides = array<i32>} : memref<104x1xf32, #tpu.memory_space<vmem>>, vector<104x1xf32>,
    } else {
    }
    %c0 = arith.constant 0 : index
    %c0_4 = arith.constant 0 : index
    %8 = vector.load %arg3[%c0, %c0_4] : memref<104x384xf32, #tpu.memory_space<vmem>>, vector<104x384xf32>
    %c0_5 = arith.constant 0 : index
    %c0_6 = arith.constant 0 : index
    %9 = vector.load %arg4[%c0_5, %c0_6] : memref<104x1xi32, #tpu.memory_space<vmem>>, vector<104x1xi32>
    %cst = arith.constant dense<0xFF800000> : vector<104xf32>
    %10 = vector.multi_reduction <maximumf>, %8, %cst [1] : vector<104x384xf32> to vector<104xf32>
    %11 = vector.shape_cast %10 : vector<104xf32> to vector<104x1xf32>
    %c0_7 = arith.constant 0 : index
    %c0_8 = arith.constant 0 : index
    %12 = vector.load %arg9[%c0_7, %c0_8] : memref<104x1xf32, #tpu.memory_space<vmem>>, vector<104x1xf32>
    %cst_9 = arith.constant dense<0.000000e+00> : vector<104xf32>
    %13 = vector.multi_reduction <add>, %8, %cst_9 [1] : vector<104x384xf32> to vector<104xf32>
    %14 = vector.shape_cast %13 : vector<104xf32> to vector<104x1xf32>
    %15 = arith.addf %12, %14 : vector<104x1xf32>
    %c0_10 = arith.constant 0 : index
    %c0_11 = arith.constant 0 : index
    %16 = vector.load %arg9[%c0_10, %c0_11] : memref<104x1xf32, #tpu.memory_space<vmem>>, vector<104x1xf32>
    tpu.vector_store %arg9[%c0_10, %c0_11], %15 {strides = array<i32>} : memref<104x1xf32, #tpu.memory_space<vmem>>, vector<104x1xf32>,
    %c384_i32 = arith.constant 384 : i32
    %17 = arith.muli %arg2, %c384_i32 : i32
    %18 = tpu.iota {dimensions = array<i32: 1>} : vector<1x384xi32>
    %19 = vector.broadcast %17 : i32 to vector<1x384xi32>
    %20 = arith.addi %19, %18 : vector<1x384xi32>
    %c0_12 = arith.constant 0 : index
    %c0_13 = arith.constant 0 : index
    %21 = vector.load %arg10[%c0_12, %c0_13] : memref<104x1xf32, #tpu.memory_space<vmem>>, vector<104x1xf32>
    %22 = vector.broadcast %20 : vector<1x384xi32> to vector<104x384xi32>
    %23 = vector.broadcast %9 : vector<104x1xi32> to vector<104x384xi32>
    %24 = arith.cmpi eq, %22, %23 : vector<104x384xi32>
    %c0_i32_14 = arith.constant 0 : i32
    %25 = arith.sitofp %c0_i32_14 : i32 to f32
    %26 = vector.broadcast %25 : f32 to vector<104x384xf32>
    %27 = arith.select %24, %8, %26 : vector<104x384xi1>, vector<104x384xf32>
    %cst_15 = arith.constant dense<0.000000e+00> : vector<104xf32>
    %28 = vector.multi_reduction <add>, %27, %cst_15 [1] : vector<104x384xf32> to vector<104xf32>
    %29 = vector.shape_cast %28 : vector<104xf32> to vector<104x1xf32>
    %30 = arith.addf %21, %29 : vector<104x1xf32>
    %c0_16 = arith.constant 0 : index
    %c0_17 = arith.constant 0 : index
    %31 = vector.load %arg10[%c0_16, %c0_17] : memref<104x1xf32, #tpu.memory_space<vmem>>, vector<104x1xf32>
    tpu.vector_store %arg10[%c0_16, %c0_17], %30 {strides = array<i32>} : memref<104x1xf32, #tpu.memory_space<vmem>>, vector<104x1xf32>,
    %c0_18 = arith.constant 0 : index
    %c0_19 = arith.constant 0 : index
    %32 = vector.load %arg7[%c0_18, %c0_19] : memref<104x1xf32, #tpu.memory_space<vmem>>, vector<104x1xf32>
    %33 = arith.maximumf %32, %11 : vector<104x1xf32>
    %c0_20 = arith.constant 0 : index
    %c0_21 = arith.constant 0 : index
    %34 = vector.load %arg7[%c0_20, %c0_21] : memref<104x1xf32, #tpu.memory_space<vmem>>, vector<104x1xf32>
    %35 = arith.subf %34, %33 : vector<104x1xf32>
    %36 = math.exp %35 : vector<104x1xf32>
    %37 = vector.broadcast %33 : vector<104x1xf32> to vector<104x384xf32>
    %38 = arith.subf %8, %37 : vector<104x384xf32>
    %39 = math.exp %38 : vector<104x384xf32>
    %cst_22 = arith.constant dense<0.000000e+00> : vector<104xf32>
    %40 = vector.multi_reduction <add>, %39, %cst_22 [1] : vector<104x384xf32> to vector<104xf32>
    %41 = vector.shape_cast %40 : vector<104xf32> to vector<104x1xf32>
    %c0_23 = arith.constant 0 : index
    %c0_24 = arith.constant 0 : index
    %42 = vector.load %arg8[%c0_23, %c0_24] : memref<104x1xf32, #tpu.memory_space<vmem>>, vector<104x1xf32>
    %43 = arith.mulf %36, %42 : vector<104x1xf32>
    %44 = arith.addf %43, %41 : vector<104x1xf32>
    %c0_25 = arith.constant 0 : index
    %c0_26 = arith.constant 0 : index
    %45 = vector.load %arg8[%c0_25, %c0_26] : memref<104x1xf32, #tpu.memory_space<vmem>>, vector<104x1xf32>
    tpu.vector_store %arg8[%c0_25, %c0_26], %44 {strides = array<i32>} : memref<104x1xf32, #tpu.memory_space<vmem>>, vector<104x1xf32>,
    %c0_27 = arith.constant 0 : index
    %c0_28 = arith.constant 0 : index
    %46 = vector.load %arg7[%c0_27, %c0_28] : memref<104x1xf32, #tpu.memory_space<vmem>>, vector<104x1xf32>
    tpu.vector_store %arg7[%c0_27, %c0_28], %33 {strides = array<i32>} : memref<104x1xf32, #tpu.memory_space<vmem>>, vector<104x1xf32>,
    %c0_i32_29 = arith.constant 0 : i32
    %47 = arith.cmpi eq, %arg2, %c0_i32_29 : i32
    %48 = arith.extui %47 : i1 to i32
    %c0_i32_30 = arith.constant 0 : i32
    %49 = arith.cmpi ne, %48, %c0_i32_30 : i32
    scf.if %49 {
      %c0_31 = arith.constant 0 : index
      %c0_32 = arith.constant 0 : index
      %50 = vector.load %arg7[%c0_31, %c0_32] : memref<104x1xf32, #tpu.memory_space<vmem>>, vector<104x1xf32>
      %c0_33 = arith.constant 0 : index
      %c0_34 = arith.constant 0 : index
      %51 = vector.load %arg8[%c0_33, %c0_34] : memref<104x1xf32, #tpu.memory_space<vmem>>, vector<104x1xf32>
      %52 = math.log %51 : vector<104x1xf32>
      %53 = arith.addf %50, %52 : vector<104x1xf32>
      %c1_i32 = arith.constant 1 : i32
      %54 = arith.muli %arg0, %c1_i32 : i32
      %55 = arith.addi %54, %arg1 : i32
      %c104_i32 = arith.constant 104 : i32
      %56 = arith.muli %55, %c104_i32 : i32
      %57 = tpu.iota {dimensions = array<i32: 0>} : vector<104x1xi32>
      %58 = vector.broadcast %56 : i32 to vector<104x1xi32>
      %59 = arith.addi %58, %57 : vector<104x1xi32>
      %c100_i32 = arith.constant 100 : i32
      %60 = vector.broadcast %c100_i32 : i32 to vector<104x1xi32>
      %61 = arith.cmpi slt, %59, %60 : vector<104x1xi32>
      %c0_35 = arith.constant 0 : index
      %c0_36 = arith.constant 0 : index
      %c0_37 = arith.constant 0 : index
      %62 = vector.load %arg5[%c0_35, %c0_36, %c0_37] : memref<1x104x1xf32, #tpu.memory_space<vmem>>, vector<1x104x1xf32>
      %63 = vector.shape_cast %62 : vector<1x104x1xf32> to vector<104x1xf32>
      %c0_38 = arith.constant 0 : index
      %c0_39 = arith.constant 0 : index
      %64 = vector.load %arg10[%c0_38, %c0_39] : memref<104x1xf32, #tpu.memory_space<vmem>>, vector<104x1xf32>
      %65 = arith.subf %53, %64 : vector<104x1xf32>
      %cst_40 = arith.constant 0.000000e+00 : f32
      %66 = vector.broadcast %cst_40 : f32 to vector<104x1xf32>
      %67 = arith.select %61, %65, %66 : vector<104x1xi1>, vector<104x1xf32>
      %68 = arith.addf %63, %67 : vector<104x1xf32>
      %c0_41 = arith.constant 0 : index
      %c0_42 = arith.constant 0 : index
      %c0_43 = arith.constant 0 : index
      %69 = vector.load %arg5[%c0_41, %c0_42, %c0_43] : memref<1x104x1xf32, #tpu.memory_space<vmem>>, vector<1x104x1xf32>
      %70 = vector.shape_cast %69 : vector<1x104x1xf32> to vector<104x1xf32>
      %71 = vector.shape_cast %68 : vector<104x1xf32> to vector<1x104x1xf32>
      tpu.vector_store %arg5[%c0_41, %c0_42, %c0_43], %71 {strides = array<i32>} : memref<1x104x1xf32, #tpu.memory_space<vmem>>, vector<1x104x1xf32>,
      %c0_44 = arith.constant 0 : index
      %c0_45 = arith.constant 0 : index
      %c0_46 = arith.constant 0 : index
      %72 = vector.load %arg6[%c0_44, %c0_45, %c0_46] : memref<1x104x1xf32, #tpu.memory_space<vmem>>, vector<1x104x1xf32>
      %73 = vector.shape_cast %72 : vector<1x104x1xf32> to vector<104x1xf32>
      %cst_47 = arith.constant 3.840000e+02 : f32
      %74 = vector.broadcast %cst_47 : f32 to vector<104x1xf32>
      %75 = arith.mulf %74, %53 : vector<104x1xf32>
      %c0_48 = arith.constant 0 : index
      %c0_49 = arith.constant 0 : index
      %76 = vector.load %arg9[%c0_48, %c0_49] : memref<104x1xf32, #tpu.memory_space<vmem>>, vector<104x1xf32>
      %77 = arith.subf %75, %76 : vector<104x1xf32>
      %cst_50 = arith.constant 0.000000e+00 : f32
      %78 = vector.broadcast %cst_50 : f32 to vector<104x1xf32>
      %79 = arith.select %61, %77, %78 : vector<104x1xi1>, vector<104x1xf32>
      %80 = arith.addf %73, %79 : vector<104x1xf32>
      %c0_51 = arith.constant 0 : index
      %c0_52 = arith.constant 0 : index
      %c0_53 = arith.constant 0 : index
      %81 = vector.load %arg6[%c0_51, %c0_52, %c0_53] : memref<1x104x1xf32, #tpu.memory_space<vmem>>, vector<1x104x1xf32>
      %82 = vector.shape_cast %81 : vector<1x104x1xf32> to vector<104x1xf32>
      %83 = vector.shape_cast %80 : vector<104x1xf32> to vector<1x104x1xf32>
      tpu.vector_store %arg6[%c0_51, %c0_52, %c0_53], %83 {strides = array<i32>} : memref<1x104x1xf32, #tpu.memory_space<vmem>>, vector<1x104x1xf32>,
    } else {
    }
    return
  }
  func.func @transform_0(%arg0: i32, %arg1: i32, %arg2: i32) -> (i32, i32) {
    %c1_i32 = arith.constant 1 : i32
    %0 = arith.muli %arg0, %c1_i32 : i32
    %1 = arith.addi %0, %arg1 : i32
    %c0_i32 = arith.constant 0 : i32
    return %1, %arg2 : i32, i32
  }
  func.func @transform_1(%arg0: i32, %arg1: i32, %arg2: i32) -> (i32, i32) {
    %c1_i32 = arith.constant 1 : i32
    %0 = arith.muli %arg0, %c1_i32 : i32
    %1 = arith.addi %0, %arg1 : i32
    %c0_i32 = arith.constant 0 : i32
    %c0_i32_0 = arith.constant 0 : i32
    return %1, %c0_i32 : i32, i32
  }
  func.func @transform_2(%arg0: i32, %arg1: i32, %arg2: i32) -> (i32, i32, i32) {
    %c0_i32 = arith.constant 0 : i32
    %c0_i32_0 = arith.constant 0 : i32
    %c0_i32_1 = arith.constant 0 : i32
    return %arg0, %c0_i32, %c0_i32_0 : i32, i32, i32
  }
  func.func @transform_3(%arg0: i32, %arg1: i32, %arg2: i32) -> (i32, i32, i32) {
    %c0_i32 = arith.constant 0 : i32
    %c0_i32_0 = arith.constant 0 : i32
    %c0_i32_1 = arith.constant 0 : i32
    return %arg0, %c0_i32, %c0_i32_0 : i32, i32, i32
  }
}

</mosaic_0001>

<bundles_post_ra>
// kernel: tpu_custom_call.1
= control target key start
LH: loop header
LB: loop body
LE: loop exit
PB: predicated region body
PF: predicated region fallthrough
CT: control target
= control target key end

     0   :  { %9 = vsyncpa [#allocation7], 0  ;;  %s1420_s15 = smov [#allocation6]   ;;  %s1421_s17 = smov 384   ;;  %s2315_s0 = inlined_call_operand.hbm [shape: f32[104,384], index: 0, kind: input, shape index: {}]   ;;  %s2316_s1 = inlined_call_operand.vmem [shape: s32[104,1], index: 1, kind: input, shape index: {}]   ;;  %s2317_s2 = inlined_call_operand.vmem [shape: f32[1,104,1], index: 2, kind: output, shape index: {0}]   ;;  %s2318_s3 = inlined_call_operand.vmem [shape: f32[1,104,1], index: 3, kind: output, shape index: {1}]  }
   0x1   :  { %s19_s14 = sshll.u32 %s2315_s0, 4  ;;  %s21_s16 = sshll.u32 %s1420_s15, 4  ;;  %s20_s14 = int_to_ptr.hbm [resolvable:$true] %s19_s14  ;;  %s22_s16 = int_to_ptr.vmem [resolvable:$true] %s21_s16 }
   0x2   :  { %s1422_s18 = smov 24  }
   0x3   :  { %27 = dma.hbm_to_vmem [thread:$0]  %s20_s14, 4992, %s22_s16, [#allocation7], %s1421_s17, %s1421_s17, %s1422_s18  }
   0x4   :  { %1418 = dma.done.wait [#allocation7], 4992  }
   0x5   :  { %1419 = vsyncadd [#allocation7], 4294962304  ;;  %v1449_v0 = vld [vmem:[#allocation6 + $0x60] sm:$0xff]  ;;  %v1451_v1 = vld [vmem:[#allocation6 + $0x68] sm:$0xff]  ;;  %vm64_vm0 = vcmask 7168  }
   0x6   :  { %v1453_v2 = vld [vmem:[#allocation6 + $0x70] sm:$0xff]  ;;  %v215_v3 = vmax.f32 %v1449_v0, %v1451_v1  ;;  %v1459_v5 = vld [vmem:[#allocation6 + $0x38] sm:$0xff]  ;;  %v1461_v6 = vld [vmem:[#allocation6 + $0x40] sm:$0xff] }
   0x7   :  { %v1457_v4 = vld [vmem:[#allocation6 + $0x30] sm:$0xff]  ;;  %v1465_v8 = vld [vmem:[#allocation6] sm:$0xff]  ;;  %v1467_v9 = vld [vmem:[#allocation6 + $0x8] sm:$0xff] }
   0x8   :  { %v207_v7 = vmax.f32 %v1457_v4, %v1459_v5  ;;  %v1469_v10 = vld [vmem:[#allocation6 + $0x10] sm:$0xff]  ;;  %v216_v11 = vmax.f32 %v215_v3, %v1453_v2  ;;  %v199_v12 = vmax.f32 %v1465_v8, %v1467_v9  ;;  %v1474_v13 = vld [vmem:[#allocation6 + $0x78] sm:$0xff]  ;;  %v1476_v14 = vld [vmem:[#allocation6 + $0x80] sm:$0xff]  ;;  %v264_v63 = vadd.f32 %v1467_v9, %v1465_v8 }
   0x9   :  { %v1479_v16 = vld [vmem:[#allocation6 + $0x48] sm:$0xff]  ;;  %v1481_v17 = vld [vmem:[#allocation6 + $0x50] sm:$0xff]  ;;  %v219_v19 = vmax.f32 %v1474_v13, %v1476_v14  ;;  %v1486_v20 = vld [vmem:[#allocation6 + $0x18] sm:$0xff] }
   0xa   :  { %v208_v15 = vmax.f32 %v207_v7, %v1461_v6  ;;  %217 = vmax.xlane.f32.xlu2 %v216_v11  ;;  %v200_v18 = vmax.f32 %v199_v12, %v1469_v10  ;;  %v1488_v21 = vld [vmem:[#allocation6 + $0x20] sm:$0xff]  ;;  %v1490_v22 = vld [vmem:[#allocation6 + $0x88] sm:$0xff]  ;;  %v211_v23 = vmax.f32 %v1479_v16, %v1481_v17  ;;  %v1494_v24 = vld [vmem:[#allocation6 + $0x58] sm:$0xff]  ;;  %v265_v12 = vadd.f32 %v264_v63, %v1469_v10 }
   0xb   :  { %v203_v25 = vmax.f32 %v1486_v20, %v1488_v21  ;;  %v1498_v26 = vld [vmem:[#allocation6 + $0x28] sm:$0xff]  ;;  %v220_v27 = vmax.f32 %v219_v19, %v1490_v22  ;;  %v1502_v29 = vld [vmem:[#allocation6 + $0xc0] sm:$0xff]  ;;  %v1509_v33 = vld [vmem:[#allocation6 + $0xb0] sm:$0xff]  ;;  %v268_v62 = vadd.f32 %v1488_v21, %v1486_v20  ;;  %v276_v19 = vadd.f32 %v1481_v17, %v1479_v16 }
   0xc   :  { %209 = vmax.xlane.f32.xlu1 %v208_v15  ;;  %201 = vmax.xlane.f32.xlu0 %v200_v18  ;;  %v212_v28 = vmax.f32 %v211_v23, %v1494_v24  ;;  %v1504_v30 = vld [vmem:[#allocation6 + $0xc8] sm:$0xff]  ;;  %v1511_v34 = vld [vmem:[#allocation6 + $0x90] sm:$0xff]  ;;  %v1513_v35 = vld [vmem:[#allocation6 + $0x98] sm:$0xff]  ;;  %v280_v18 = vadd.f32 %v1451_v1, %v1449_v0  ;;  %v272_v23 = vadd.f32 %v1459_v5, %v1457_v4 }
   0xd   :  { %v204_v31 = vmax.f32 %v203_v25, %v1498_v26  ;;  %v1507_v32 = vld [vmem:[#allocation6 + $0xa8] sm:$0xff]  ;;  %v231_v36 = vmax.f32 %v1502_v29, %v1504_v30  ;;  %v1517_v37 = vld [vmem:[#allocation6 + $0xd0] sm:$0xff]  ;;  %v1521_v39 = vld [vmem:[#allocation6 + $0xb8] sm:$0xff]  ;;  %v223_v40 = vmax.f32 %v1511_v34, %v1513_v35  ;;  %v269_v11 = vadd.f32 %v268_v62, %v1498_v26 }
   0xe   :  { %v227_v38 = vmax.f32 %v1507_v32, %v1509_v33  ;;  %v1525_v41 = vld [vmem:[#allocation6 + $0xa0] sm:$0xff]  ;;  %v1529_v44 = vld [vmem:[#allocation6 + $0x108] sm:$0xff]  ;;  %v1531_v45 = vld [vmem:[#allocation6 + $0x110] sm:$0xff]  ;;  %v1423_v25 = vmov 0  }
   0xf   :  { %v232_v42 = vmax.f32 %v231_v36, %v1517_v37  ;;  %v224_v46 = vmax.f32 %v223_v40, %v1525_v41  ;;  %v1534_v47 = vld [vmem:[#allocation6 + $0xf0] sm:$0xff]  ;;  %v1536_v48 = vld [vmem:[#allocation6 + $0xf8] sm:$0xff]  ;;  %v1540_v50 = vld [vmem:[#allocation6 + $0xe0] sm:$0xff]  ;;  %v243_v51 = vmax.f32 %v1529_v44, %v1531_v45  ;;  %1225 = vset.pattern.permute.xlu2 %v1423_v25  ;;  %1227 = vset.pattern.permute.xlu1 %v1423_v25 }
  0x10   :  { %v228_v43 = vmax.f32 %v227_v38, %v1521_v39  ;;  %v1538_v49 = vld [vmem:[#allocation6 + $0xd8] sm:$0xff]  ;;  %v239_v53 = vmax.f32 %v1534_v47, %v1536_v48  ;;  %v1548_v54 = vld [vmem:[#allocation6 + $0x100] sm:$0xff]  ;;  %v1552_v56 = vld [vmem:[#allocation6 + $0xe8] sm:$0xff]  ;;  %1226 = vset.pattern.permute.xlu0 %v1423_v25  ;;  %v292_v36 = vadd.f32 %v1509_v33, %v1507_v32  ;;  %v288_v38 = vadd.f32 %v1513_v35, %v1511_v34 }
  0x11   :  { %v1544_v52 = vld [vmem:[#allocation6 + $0x118] sm:$0xff]  ;;  %v235_v55 = vmax.f32 %v1538_v49, %v1540_v50  ;;  %v1557_v60 = vld [vmem:[#allocation6 + $0x120] sm:$0xff]  ;;  %v1559_v61 = vld [vmem:[#allocation6 + $0x128] sm:$0xff]  ;;  %v284_v40 = vadd.f32 %v1476_v14, %v1474_v13  ;;  %v308_v63 = vadd.f32 %v1531_v45, %v1529_v44  ;;  %v1425_v25 = vmov 0.0  }
  0x12   :  { %221 = vmax.xlane.f32.xlu2 %v220_v27  ;;  %v244_v57 = vmax.f32 %v243_v51, %v1544_v52  ;;  %v240_v58 = vmax.f32 %v239_v53, %v1548_v54  ;;  %2347 = vst [vmem:[#allocation9_spill] sm:$0xff] %v1557_v60  ;;  %v247_v3 = vmax.f32 %v1557_v60, %v1559_v61  ;;  %v1567_v7 = vld [vmem:[#allocation6 + $0x130] sm:$0xff] }
  0x13   :  { %v236_v59 = vmax.f32 %v235_v55, %v1552_v56  ;;  %2348 = vst [vmem:[#allocation10_spill] sm:$0xff] %v1559_v61  ;;  %v281_v27 = vadd.f32 %v280_v18, %v1453_v2  ;;  %v304_v51 = vadd.f32 %v1536_v48, %v1534_v47  ;;  %v300_v53 = vadd.f32 %v1540_v50, %v1538_v49  ;;  %v187_v18 = vld [vmem:[%s2316_s1 + $0x8] sm:$0xff] }
  0x14   :  { %213 = vmax.xlane.f32.xlu1 %v212_v28  ;;  %205 = vmax.xlane.f32.xlu0 %v204_v31  ;;  %2349 = vst [vmem:[#allocation11_spill] sm:$0xff] %v1567_v7  ;;  %v248_v15 = vmax.f32 %v247_v3, %v1567_v7  ;;  %v277_v28 = vadd.f32 %v276_v19, %v1494_v24  ;;  %v189_v19 = vld [vmem:[%s2316_s1 + $0x18] sm:$0xff] }
  0x15   :  { %v273_v31 = vadd.f32 %v272_v23, %v1461_v6  ;;  %v296_v55 = vadd.f32 %v1504_v30, %v1502_v29  ;;  %v312_v62 = vadd.f32 %v1559_v61, %v1557_v60  ;;  %v188_v23 = vld [vmem:[%s2316_s1 + $0x10] sm:$0xff]  ;;  %122 = vst.msk [vmem:[#allocation4 + $0x8] sm:$0xff] %vm64_vm0, %v1425_v25  ;;  %v344_v61 = vlaneseq }
  0x16   :  { %65 = vst.msk [vmem:[%s2317_s2] sm:$0xff] %vm64_vm0, %v1425_v25 }
  0x17   :  { %v313_v3 = vadd.f32 %v312_v62, %v1567_v7  ;;  %66 = vst.msk [vmem:[%s2317_s2 + $0x8] sm:$0xff] %vm64_vm0, %v1425_v25 }
  0x18   :  { %67 = vst.msk [vmem:[%s2317_s2 + $0x10] sm:$0xff] %vm64_vm0, %v1425_v25 }
  0x19   :  { %68 = vst.msk [vmem:[%s2317_s2 + $0x18] sm:$0xff] %vm64_vm0, %v1425_v25 }
  0x1a   :  { %233 = vmax.xlane.f32.xlu2 %v232_v42  ;;  %v293_v42 = vadd.f32 %v292_v36, %v1521_v39  ;;  %69 = vst.msk [vmem:[%s2317_s2 + $0x20] sm:$0xff] %vm64_vm0, %v1425_v25  ;;  %v197_v36 = vld [vmem:[%s2316_s1 + $0x58] sm:$0xff] }
  0x1b   :  { %70 = vst.msk [vmem:[%s2317_s2 + $0x28] sm:$0xff] %vm64_vm0, %v1425_v25 }
  0x1c   :  { %229 = vmax.xlane.f32.xlu1 %v228_v43  ;;  %225 = vmax.xlane.f32.xlu0 %v224_v46  ;;  %v289_v43 = vadd.f32 %v288_v38, %v1525_v41  ;;  %v285_v46 = vadd.f32 %v284_v40, %v1490_v22  ;;  %71 = vst.msk [vmem:[%s2317_s2 + $0x30] sm:$0xff] %vm64_vm0, %v1425_v25  ;;  %v192_v38 = vld [vmem:[%s2316_s1 + $0x30] sm:$0xff]  ;;  %v193_v40 = vld [vmem:[%s2316_s1 + $0x38] sm:$0xff] }
  0x1d   :  { %72 = vst.msk [vmem:[%s2317_s2 + $0x38] sm:$0xff] %vm64_vm0, %v1425_v25 }
  0x1e   :  { %73 = vst.msk [vmem:[%s2317_s2 + $0x40] sm:$0xff] %vm64_vm0, %v1425_v25 }
  0x1f   :  { %74 = vst.msk [vmem:[%s2317_s2 + $0x48] sm:$0xff] %vm64_vm0, %v1425_v25 }
  0x20   :  { %75 = vst.msk [vmem:[%s2317_s2 + $0x50] sm:$0xff] %vm64_vm0, %v1425_v25 }
  0x21   :  { %76 = vst.msk [vmem:[%s2317_s2 + $0x58] sm:$0xff] %vm64_vm0, %v1425_v25 }
  0x22   :  { %245 = vmax.xlane.f32.xlu2 %v244_v57  ;;  %v305_v57 = vadd.f32 %v304_v51, %v1548_v54  ;;  %77 = vst.msk [vmem:[%s2317_s2 + $0x60] sm:$0xff] %vm64_vm0, %v1425_v25 }
  0x23   :  { %78 = vst.msk [vmem:[%s2318_s3] sm:$0xff] %vm64_vm0, %v1425_v25 }
  0x24   :  { %241 = vmax.xlane.f32.xlu1 %v240_v58  ;;  %237 = vmax.xlane.f32.xlu0 %v236_v59  ;;  %v301_v58 = vadd.f32 %v300_v53, %v1552_v56  ;;  %v297_v59 = vadd.f32 %v296_v55, %v1517_v37  ;;  %79 = vst.msk [vmem:[%s2318_s3 + $0x8] sm:$0xff] %vm64_vm0, %v1425_v25 }
  0x25   :  { %80 = vst.msk [vmem:[%s2318_s3 + $0x10] sm:$0xff] %vm64_vm0, %v1425_v25 }
  0x26   :  { %81 = vst.msk [vmem:[%s2318_s3 + $0x18] sm:$0xff] %vm64_vm0, %v1425_v25 }
  0x27   :  { %82 = vst.msk [vmem:[%s2318_s3 + $0x20] sm:$0xff] %vm64_vm0, %v1425_v25 }
  0x28   :  { %83 = vst.msk [vmem:[%s2318_s3 + $0x28] sm:$0xff] %vm64_vm0, %v1425_v25 }
  0x29   :  { %84 = vst.msk [vmem:[%s2318_s3 + $0x30] sm:$0xff] %vm64_vm0, %v1425_v25 }
  0x2a   :  { %270 = vadd.xlane.f32.xlu2 %v269_v11  ;;  %v309_v11 = vadd.f32 %v308_v63, %v1544_v52  ;;  %85 = vst.msk [vmem:[%s2318_s3 + $0x38] sm:$0xff] %vm64_vm0, %v1425_v25 }
  0x2b   :  { %86 = vst.msk [vmem:[%s2318_s3 + $0x40] sm:$0xff] %vm64_vm0, %v1425_v25 }
  0x2c   :  { %266 = vadd.xlane.f32.xlu1 %v265_v12  ;;  %249 = vmax.xlane.f32.xlu0 %v248_v15  ;;  %v186_v12 = vld [vmem:[%s2316_s1] sm:$0xff]  ;;  %v1424_v15 = vmov -inf   ;;  %87 = vst.msk [vmem:[%s2318_s3 + $0x48] sm:$0xff] %vm64_vm0, %v1425_v25 }
  0x2d   :  { %99 = vst.msk [vmem:[#allocation2 + $0x20] sm:$0xff] %vm64_vm0, %v1424_v15 }
  0x2e   :  { %95 = vst.msk [vmem:[#allocation2] sm:$0xff] %vm64_vm0, %v1424_v15 }
  0x2f   :  { %96 = vst.msk [vmem:[#allocation2 + $0x8] sm:$0xff] %vm64_vm0, %v1424_v15 }
  0x30   :  { %97 = vst.msk [vmem:[#allocation2 + $0x10] sm:$0xff] %vm64_vm0, %v1424_v15 }
  0x31   :  { %98 = vst.msk [vmem:[#allocation2 + $0x18] sm:$0xff] %vm64_vm0, %v1424_v15 }
  0x32   :  { %282 = vadd.xlane.f32.xlu2 %v281_v27  ;;  %100 = vst.msk [vmem:[#allocation2 + $0x28] sm:$0xff] %vm64_vm0, %v1424_v15  ;;  %v194_v27 = vld [vmem:[%s2316_s1 + $0x40] sm:$0xff] }
  0x33   :  { %101 = vst.msk [vmem:[#allocation2 + $0x30] sm:$0xff] %vm64_vm0, %v1424_v15 }
  0x34   :  { %278 = vadd.xlane.f32.xlu1 %v277_v28  ;;  %274 = vadd.xlane.f32.xlu0 %v273_v31  ;;  %102 = vst.msk [vmem:[#allocation2 + $0x38] sm:$0xff] %vm64_vm0, %v1424_v15  ;;  %v190_v28 = vld [vmem:[%s2316_s1 + $0x20] sm:$0xff]  ;;  %v191_v31 = vld [vmem:[%s2316_s1 + $0x28] sm:$0xff] }
  0x35   :  { %103 = vst.msk [vmem:[#allocation2 + $0x40] sm:$0xff] %vm64_vm0, %v1424_v15  ;;  %v1780_v55 = vld [vmem:[#allocation2] sm:$0xff] }
  0x36   :  { %104 = vst.msk [vmem:[#allocation2 + $0x48] sm:$0xff] %vm64_vm0, %v1424_v15 }
  0x37   :  { %105 = vst.msk [vmem:[#allocation2 + $0x50] sm:$0xff] %vm64_vm0, %v1424_v15  ;;  %v1773_v51 = vld [vmem:[#allocation2 + $0x10] sm:$0xff] }
  0x38   :  { %106 = vst.msk [vmem:[#allocation2 + $0x58] sm:$0xff] %vm64_vm0, %v1424_v15 }
  0x39   :  { %107 = vst.msk [vmem:[#allocation2 + $0x60] sm:$0xff] %vm64_vm0, %v1424_v15  ;;  %v1817_v15 = vld [vmem:[#allocation2 + $0x8] sm:$0xff] }
  0x3a   :  { %294 = vadd.xlane.f32.xlu2 %v293_v42  ;;  %v195_v42 = vld [vmem:[%s2316_s1 + $0x48] sm:$0xff]  ;;  %2351 = vst [vmem:[#allocation13_spill] sm:$0xff] %v1773_v51 }
  0x3b   :  { %88 = vst.msk [vmem:[%s2318_s3 + $0x50] sm:$0xff] %vm64_vm0, %v1425_v25 }
  0x3c   :  { %290 = vadd.xlane.f32.xlu1 %v289_v43  ;;  %286 = vadd.xlane.f32.xlu0 %v285_v46  ;;  %v196_v43 = vld [vmem:[%s2316_s1 + $0x50] sm:$0xff]  ;;  %v1766_v46 = vld [vmem:[#allocation2 + $0x20] sm:$0xff]  ;;  %2352 = vst [vmem:[#allocation14_spill] sm:$0xff] %v1780_v55 }
  0x3d   :  { %2350 = vst [vmem:[#allocation12_spill] sm:$0xff] %v1766_v46 }
  0x3e   :  { %89 = vst.msk [vmem:[%s2318_s3 + $0x58] sm:$0xff] %vm64_vm0, %v1425_v25 }
  0x3f   :  { %90 = vst.msk [vmem:[%s2318_s3 + $0x60] sm:$0xff] %vm64_vm0, %v1425_v25 }
  0x40   :  { %108 = vst.msk [vmem:[#allocation3] sm:$0xff] %vm64_vm0, %v1425_v25 }
  0x41   :  { %109 = vst.msk [vmem:[#allocation3 + $0x8] sm:$0xff] %vm64_vm0, %v1425_v25 }
  0x42   :  { %306 = vadd.xlane.f32.xlu2 %v305_v57  ;;  %110 = vst.msk [vmem:[#allocation3 + $0x10] sm:$0xff] %vm64_vm0, %v1425_v25 }
  0x43   :  { %2356 = vst [vmem:[#allocation18_spill] sm:$0xff] %v1817_v15 }
  0x44   :  { %302 = vadd.xlane.f32.xlu1 %v301_v58  ;;  %298 = vadd.xlane.f32.xlu0 %v297_v59  ;;  %111 = vst.msk [vmem:[#allocation3 + $0x18] sm:$0xff] %vm64_vm0, %v1425_v25 }
  0x45   :  { %112 = vst.msk [vmem:[#allocation3 + $0x20] sm:$0xff] %vm64_vm0, %v1425_v25 }
  0x46   :  { %113 = vst.msk [vmem:[#allocation3 + $0x28] sm:$0xff] %vm64_vm0, %v1425_v25 }
  0x47   :  { %114 = vst.msk [vmem:[#allocation3 + $0x30] sm:$0xff] %vm64_vm0, %v1425_v25 }
  0x48   :  { %115 = vst.msk [vmem:[#allocation3 + $0x38] sm:$0xff] %vm64_vm0, %v1425_v25 }
  0x49   :  { %116 = vst.msk [vmem:[#allocation3 + $0x40] sm:$0xff] %vm64_vm0, %v1425_v25 }
  0x4a   :  { %117 = vst.msk [vmem:[#allocation3 + $0x48] sm:$0xff] %vm64_vm0, %v1425_v25 }
  0x4b   :  { %118 = vst.msk [vmem:[#allocation3 + $0x50] sm:$0xff] %vm64_vm0, %v1425_v25 }
  0x4c   :  { %314 = vadd.xlane.f32.xlu1 %v313_v3  ;;  %310 = vadd.xlane.f32.xlu0 %v309_v11  ;;  %v1809_v3 = vld [vmem:[#allocation2 + $0x28] sm:$0xff]  ;;  %v1813_v11 = vld [vmem:[#allocation2 + $0x18] sm:$0xff]  ;;  %119 = vst.msk [vmem:[#allocation3 + $0x58] sm:$0xff] %vm64_vm0, %v1425_v25 }
  0x4d   :  { %2354 = vst [vmem:[#allocation16_spill] sm:$0xff] %v1809_v3 }
  0x4e   :  { %2355 = vst [vmem:[#allocation17_spill] sm:$0xff] %v1813_v11 }
  0x4f   :  { %120 = vst.msk [vmem:[#allocation3 + $0x60] sm:$0xff] %vm64_vm0, %v1425_v25 }
  0x50   :  { %121 = vst.msk [vmem:[#allocation4] sm:$0xff] %vm64_vm0, %v1425_v25 }
  0x51   :  { %123 = vst.msk [vmem:[#allocation4 + $0x10] sm:$0xff] %vm64_vm0, %v1425_v25 }
  0x52   :  { %124 = vst.msk [vmem:[#allocation4 + $0x18] sm:$0xff] %vm64_vm0, %v1425_v25 }
  0x53   :  { %125 = vst.msk [vmem:[#allocation4 + $0x20] sm:$0xff] %vm64_vm0, %v1425_v25 }
  0x54   :  { %126 = vst.msk [vmem:[#allocation4 + $0x28] sm:$0xff] %vm64_vm0, %v1425_v25 }
  0x55   :  { %127 = vst.msk [vmem:[#allocation4 + $0x30] sm:$0xff] %vm64_vm0, %v1425_v25 }
  0x56   :  { %128 = vst.msk [vmem:[#allocation4 + $0x38] sm:$0xff] %vm64_vm0, %v1425_v25 }
  0x57   :  { %129 = vst.msk [vmem:[#allocation4 + $0x40] sm:$0xff] %vm64_vm0, %v1425_v25 }
  0x58   :  { %130 = vst.msk [vmem:[#allocation4 + $0x48] sm:$0xff] %vm64_vm0, %v1425_v25 }
  0x59   :  { %131 = vst.msk [vmem:[#allocation4 + $0x50] sm:$0xff] %vm64_vm0, %v1425_v25 }
  0x5a   :  { %366 = vperm.xlu2 %1225, %v186_v12   ;;  %132 = vst.msk [vmem:[#allocation4 + $0x58] sm:$0xff] %vm64_vm0, %v1425_v25 }
  0x5b   :  { %133 = vst.msk [vmem:[#allocation4 + $0x60] sm:$0xff] %vm64_vm0, %v1425_v25 }
  0x5c   :  { %134 = vst.msk [vmem:[#allocation5] sm:$0xff] %vm64_vm0, %v1425_v25 }
  0x5d   :  { %135 = vst.msk [vmem:[#allocation5 + $0x8] sm:$0xff] %vm64_vm0, %v1425_v25 }
  0x5e   :  { %136 = vst.msk [vmem:[#allocation5 + $0x10] sm:$0xff] %vm64_vm0, %v1425_v25 }
  0x5f   :  { %137 = vst.msk [vmem:[#allocation5 + $0x18] sm:$0xff] %vm64_vm0, %v1425_v25 }
  0x60   :  { %369 = vperm.xlu0 %1226, %v187_v18   ;;  %138 = vst.msk [vmem:[#allocation5 + $0x20] sm:$0xff] %vm64_vm0, %v1425_v25 }
  0x61   :  { %139 = vst.msk [vmem:[#allocation5 + $0x28] sm:$0xff] %vm64_vm0, %v1425_v25 }
  0x62   :  { %375 = vperm.xlu2 %1225, %v189_v19   ;;  %140 = vst.msk [vmem:[#allocation5 + $0x30] sm:$0xff] %vm64_vm0, %v1425_v25 }
  0x63   :  { %141 = vst.msk [vmem:[#allocation5 + $0x38] sm:$0xff] %vm64_vm0, %v1425_v25 }
  0x64   :  { %142 = vst.msk [vmem:[#allocation5 + $0x40] sm:$0xff] %vm64_vm0, %v1425_v25 }
  0x65   :  { %372 = vperm.xlu1 %1227, %v188_v23   ;;  %143 = vst.msk [vmem:[#allocation5 + $0x48] sm:$0xff] %vm64_vm0, %v1425_v25 }
  0x66   :  { %144 = vst.msk [vmem:[#allocation5 + $0x50] sm:$0xff] %vm64_vm0, %v1425_v25 }
  0x67   :  { %145 = vst.msk [vmem:[#allocation5 + $0x58] sm:$0xff] %vm64_vm0, %v1425_v25 }
  0x68   :  { %390 = vperm.xlu0 %1226, %v194_v27   ;;  %146 = vst.msk [vmem:[#allocation5 + $0x60] sm:$0xff] %vm64_vm0, %v1425_v25  ;;  %v261_v25 = vld [vmem:[#allocation4 + $0x50] sm:$0xff] }
  0x6a   :  { %378 = vperm.xlu2 %1225, %v190_v28  }
  0x6d   :  { %381 = vperm.xlu1 %1227, %v191_v31   ;;  %v1840_v31 = vld [vmem:[#allocation2 + $0x40] sm:$0xff] }
  0x6e   :  { %2358 = vst [vmem:[#allocation20_spill] sm:$0xff] %v1840_v31 }
  0x70   :  { %399 = vperm.xlu0 %1226, %v197_v36   ;;  %v1844_v36 = vld [vmem:[#allocation2 + $0x38] sm:$0xff] }
  0x71   :  { %2359 = vst [vmem:[#allocation21_spill] sm:$0xff] %v1844_v36 }
  0x72   :  { %384 = vperm.xlu2 %1225, %v192_v38  }
  0x75   :  { %387 = vperm.xlu1 %1227, %v193_v40  }
  0x7a   :  { %393 = vperm.xlu2 %1225, %v195_v42  }
  0x7d   :  { %396 = vperm.xlu1 %1227, %v196_v43   ;;  %v218_v53 = vpop.xlane.xlu2 %217 }
  0x7e   :  { %v1788_v57 = vmax.f32 %v1766_v46, %v218_v53 }
  0x7f   :  { %v210_v58 = vpop.xlane.xlu1 %209  ;;  %v202_v62 = vpop.xlane.xlu0 %201 }
  0x80   :  { %2353 = vst [vmem:[#allocation15_spill] sm:$0xff] %v1788_v57  ;;  %v1796_v59 = vmax.f32 %v1773_v51, %v210_v58  ;;  %v1803_v63 = vmax.f32 %v1780_v55, %v202_v62  ;;  %v1866_v58 = vld [vmem:[#allocation2 + $0x58] sm:$0xff]  ;;  %v1870_v62 = vld [vmem:[#allocation2 + $0x50] sm:$0xff]  ;;  %v1934_v51 = vld [vmem:[#allocation2 + $0x48] sm:$0xff] }
  0x81   :  { %915 = vst.msk [vmem:[#allocation2 + $0x20] sm:$0xff] %vm64_vm0, %v1788_v57  ;;  %v255_v55 = vld [vmem:[#allocation4 + $0x20] sm:$0xff]  ;;  %v258_v57 = vld [vmem:[#allocation4 + $0x38] sm:$0xff] }
  0x82   :  { %913 = vst.msk [vmem:[#allocation2 + $0x10] sm:$0xff] %vm64_vm0, %v1796_v59 }
  0x83   :  { %911 = vst.msk [vmem:[#allocation2] sm:$0xff] %vm64_vm0, %v1803_v63 }
  0x84   :  { %2361 = vst [vmem:[#allocation23_spill] sm:$0xff] %v1866_v58 }
  0x85   :  { %v222_v12 = vpop.xlane.xlu2 %221  ;;  %2362 = vst [vmem:[#allocation24_spill] sm:$0xff] %v1870_v62 }
  0x86   :  { %v1822_v18 = vmax.f32 %v1809_v3, %v222_v12  ;;  %2365 = vst [vmem:[#allocation27_spill] sm:$0xff] %v1934_v51 }
  0x87   :  { %v214_v19 = vpop.xlane.xlu1 %213  ;;  %v206_v27 = vpop.xlane.xlu0 %205 }
  0x88   :  { %v1827_v23 = vmax.f32 %v1813_v11, %v214_v19  ;;  %916 = vst.msk [vmem:[#allocation2 + $0x28] sm:$0xff] %vm64_vm0, %v1822_v18  ;;  %v1834_v28 = vmax.f32 %v1817_v15, %v206_v27  ;;  %v251_v15 = vld [vmem:[#allocation4] sm:$0xff] }
  0x89   :  { %v1923_v11 = vld [vmem:[#allocation2 + $0x30] sm:$0xff] }
  0x8a   :  { %2357 = vst [vmem:[#allocation19_spill] sm:$0xff] %v1834_v28 }
  0x8b   :  { %914 = vst.msk [vmem:[#allocation2 + $0x18] sm:$0xff] %vm64_vm0, %v1827_v23 }
  0x8c   :  { %912 = vst.msk [vmem:[#allocation2 + $0x8] sm:$0xff] %vm64_vm0, %v1834_v28 }
  0x8d   :  { %v234_v38 = vpop.xlane.xlu2 %233  ;;  %2364 = vst [vmem:[#allocation26_spill] sm:$0xff] %v1923_v11 }
  0x8e   :  { %v1851_v40 = vmax.f32 %v1840_v31, %v234_v38  ;;  %v254_v31 = vld [vmem:[#allocation4 + $0x18] sm:$0xff] }
  0x8f   :  { %v230_v42 = vpop.xlane.xlu1 %229  ;;  %v226_v53 = vpop.xlane.xlu0 %225 }
  0x90   :  { %v1856_v43 = vmax.f32 %v1844_v36, %v230_v42  ;;  %919 = vst.msk [vmem:[#allocation2 + $0x40] sm:$0xff] %vm64_vm0, %v1851_v40  ;;  %v1932_v3 = vmax.f32 %v1923_v11, %v226_v53 }
  0x92   :  { %2360 = vst [vmem:[#allocation22_spill] sm:$0xff] %v1856_v43 }
  0x93   :  { %918 = vst.msk [vmem:[#allocation2 + $0x38] sm:$0xff] %vm64_vm0, %v1856_v43 }
  0x94   :  { %917 = vst.msk [vmem:[#allocation2 + $0x30] sm:$0xff] %vm64_vm0, %v1932_v3 }
  0x95   :  { %v246_v12 = vpop.xlane.xlu2 %245 }
  0x96   :  { %v1877_v19 = vmax.f32 %v1866_v58, %v246_v12  ;;  %v252_v12 = vld [vmem:[#allocation4 + $0x8] sm:$0xff] }
  0x97   :  { %v242_v27 = vpop.xlane.xlu1 %241  ;;  %v238_v42 = vpop.xlane.xlu0 %237 }
  0x98   :  { %v1882_v38 = vmax.f32 %v1870_v62, %v242_v27  ;;  %922 = vst.msk [vmem:[#allocation2 + $0x58] sm:$0xff] %vm64_vm0, %v1877_v19  ;;  %v1942_v53 = vmax.f32 %v1934_v51, %v238_v42  ;;  %v256_v42 = vld [vmem:[#allocation4 + $0x28] sm:$0xff] }
  0x9a   :  { %2363 = vst [vmem:[#allocation25_spill] sm:$0xff] %v1882_v38 }
  0x9b   :  { %921 = vst.msk [vmem:[#allocation2 + $0x50] sm:$0xff] %vm64_vm0, %v1882_v38 }
  0x9c   :  { %2366 = vst [vmem:[#allocation28_spill] sm:$0xff] %v1942_v53 }
  0x9d   :  { %v271_v27 = vpop.xlane.xlu2 %270  ;;  %920 = vst.msk [vmem:[#allocation2 + $0x48] sm:$0xff] %vm64_vm0, %v1942_v53 }
  0x9e   :  { %v317_v62 = vadd.f32 %v271_v27, %v252_v12 }
  0x9f   :  { %v267_v36 = vpop.xlane.xlu1 %266  ;;  %v250_v46 = vpop.xlane.xlu0 %249 }
  0xa0   :  { %331 = vst.msk [vmem:[#allocation4 + $0x8] sm:$0xff] %vm64_vm0, %v317_v62  ;;  %v316_v58 = vadd.f32 %v267_v36, %v251_v15  ;;  %v257_v36 = vld [vmem:[#allocation4 + $0x30] sm:$0xff] }
  0xa2   :  { %330 = vst.msk [vmem:[#allocation4] sm:$0xff] %vm64_vm0, %v316_v58  ;;  %v260_v58 = vld [vmem:[#allocation4 + $0x48] sm:$0xff] }
  0xa5   :  { %v283_v12 = vpop.xlane.xlu2 %282 }
  0xa6   :  { %v320_v43 = vadd.f32 %v283_v12, %v255_v55  ;;  %v1947_v12 = vld [vmem:[#allocation2 + $0x60] sm:$0xff] }
  0xa7   :  { %v279_v62 = vpop.xlane.xlu1 %278  ;;  %v275_v27 = vpop.xlane.xlu0 %274 }
  0xa8   :  { %v319_v15 = vadd.f32 %v279_v62, %v254_v31  ;;  %334 = vst.msk [vmem:[#allocation4 + $0x20] sm:$0xff] %vm64_vm0, %v320_v43  ;;  %v253_v31 = vld [vmem:[#allocation4 + $0x10] sm:$0xff]  ;;  %v1954_v62 = vmax.f32 %v1947_v12, %v250_v46  ;;  %v259_v43 = vld [vmem:[#allocation4 + $0x40] sm:$0xff] }
  0xaa   :  { %333 = vst.msk [vmem:[#allocation4 + $0x18] sm:$0xff] %vm64_vm0, %v319_v15  ;;  %v1958_v15 = vand.u32 127, %v344_v61 }
  0xab   :  { %923 = vst.msk [vmem:[#allocation2 + $0x60] sm:$0xff] %vm64_vm0, %v1954_v62 }
  0xad   :  { %v295_v38 = vpop.xlane.xlu2 %294 }
  0xae   :  { %v323_v11 = vadd.f32 %v295_v38, %v258_v57 }
  0xaf   :  { %v291_v28 = vpop.xlane.xlu1 %290  ;;  %v287_v7 = vpop.xlane.xlu0 %286 }
  0xb0   :  { %v322_v55 = vadd.f32 %v291_v28, %v257_v36  ;;  %337 = vst.msk [vmem:[#allocation4 + $0x38] sm:$0xff] %vm64_vm0, %v323_v11  ;;  %v318_v36 = vadd.f32 %v275_v27, %v253_v31  ;;  %v321_v60 = vadd.f32 %v287_v7, %v256_v42  ;;  %v1966_v11 = vadd.s32 128, %v1958_v15 }
  0xb1   :  { %v1969_v27 = vadd.s32 256, %v1958_v15 }
  0xb2   :  { %336 = vst.msk [vmem:[#allocation4 + $0x30] sm:$0xff] %vm64_vm0, %v322_v55  ;;  %v263_v55 = vld [vmem:[#allocation4 + $0x60] sm:$0xff] }
  0xb3   :  { %332 = vst.msk [vmem:[#allocation4 + $0x10] sm:$0xff] %vm64_vm0, %v318_v36 }
  0xb4   :  { %335 = vst.msk [vmem:[#allocation4 + $0x28] sm:$0xff] %vm64_vm0, %v321_v60 }
  0xb5   :  { %v307_v57 = vpop.xlane.xlu2 %306 }
  0xb6   :  { %v326_v28 = vadd.f32 %v307_v57, %v261_v25  ;;  %v262_v25 = vld [vmem:[#allocation4 + $0x58] sm:$0xff] }
  0xb7   :  { %v303_v38 = vpop.xlane.xlu1 %302  ;;  %v299_v53 = vpop.xlane.xlu0 %298 }
  0xb8   :  { %v325_v51 = vadd.f32 %v303_v38, %v260_v58  ;;  %340 = vst.msk [vmem:[#allocation4 + $0x50] sm:$0xff] %vm64_vm0, %v326_v28  ;;  %v324_v46 = vadd.f32 %v299_v53, %v259_v43 }
  0xba   :  { %339 = vst.msk [vmem:[#allocation4 + $0x48] sm:$0xff] %vm64_vm0, %v325_v51 }
  0xbb   :  { %338 = vst.msk [vmem:[#allocation4 + $0x40] sm:$0xff] %vm64_vm0, %v324_v46 }
  0xbd   :  { %v367_v7 = vpop.permute.xlu2 %366 }
  0xbe   :  { %vm404_vm1 = vcmp.eq.s32.totalorder %v1958_v15, %v367_v7  ;;  %vm405_vm2 = vcmp.eq.s32.totalorder %v1966_v11, %v367_v7  ;;  %vm406_vm3 = vcmp.eq.s32.totalorder %v1969_v27, %v367_v7 }
  0xbf   :  { %v315_v51 = vpop.xlane.xlu1 %314  ;;  %v443_v31 = vsel %vm404_vm1, %v1465_v8, 0.0  ;;  %v444_v58 = vsel %vm405_vm2, %v1467_v9, 0.0  ;;  %v445_v42 = vsel %vm406_vm3, %v1469_v10, 0.0  ;;  %v311_v60 = vpop.xlane.xlu0 %310 }
  0xc0   :  { %v328_v53 = vadd.f32 %v315_v51, %v263_v55  ;;  %v482_v57 = vadd.f32 %v444_v58, %v443_v31  ;;  %v327_v43 = vadd.f32 %v311_v60, %v262_v25 }
  0xc2   :  { %342 = vst.msk [vmem:[#allocation4 + $0x60] sm:$0xff] %vm64_vm0, %v328_v53  ;;  %v483_v28 = vadd.f32 %v482_v57, %v445_v42 }
  0xc3   :  { %341 = vst.msk [vmem:[#allocation4 + $0x58] sm:$0xff] %vm64_vm0, %v327_v43 }
  0xc4   :  { %484 = vadd.xlane.f32.xlu1 %v483_v28 }
  0xc5   :  { %v376_v38 = vpop.permute.xlu2 %375 }
  0xc6   :  { %vm413_vm4 = vcmp.eq.s32.totalorder %v1958_v15, %v376_v38  ;;  %vm414_vm5 = vcmp.eq.s32.totalorder %v1966_v11, %v376_v38  ;;  %vm415_vm6 = vcmp.eq.s32.totalorder %v1969_v27, %v376_v38 }
  0xc7   :  { %v452_v8 = vsel %vm413_vm4, %v1479_v16, 0.0  ;;  %v453_v9 = vsel %vm414_vm5, %v1481_v17, 0.0  ;;  %v454_v10 = vsel %vm415_vm6, %v1494_v24, 0.0 }
  0xc8   :  { %v494_v36 = vadd.f32 %v453_v9, %v452_v8 }
  0xca   :  { %v495_v46 = vadd.f32 %v494_v36, %v454_v10 }
  0xcc   :  { %496 = vadd.xlane.f32.xlu1 %v495_v46 }
  0xcd   :  { %v379_v55 = vpop.permute.xlu2 %378 }
  0xce   :  { %vm416_vm10 = vcmp.eq.s32.totalorder %v1958_v15, %v379_v55  ;;  %vm417_vm11 = vcmp.eq.s32.totalorder %v1966_v11, %v379_v55  ;;  %vm418_vm3 = vcmp.eq.s32.totalorder %v1969_v27, %v379_v55 }
  0xcf   :  { %v455_v28 = vsel %vm416_vm10, %v1449_v0, 0.0 }
  0xd2   :  { %v370_v7 = vpop.permute.xlu0 %369 }
  0xd3   :  { %vm407_vm7 = vcmp.eq.s32.totalorder %v1958_v15, %v370_v7  ;;  %vm408_vm8 = vcmp.eq.s32.totalorder %v1966_v11, %v370_v7  ;;  %vm409_vm9 = vcmp.eq.s32.totalorder %v1969_v27, %v370_v7 }
  0xd4   :  { %v446_v25 = vsel %vm407_vm7, %v1486_v20, 0.0  ;;  %v447_v51 = vsel %vm408_vm8, %v1488_v21, 0.0  ;;  %v448_v53 = vsel %vm409_vm9, %v1498_v26, 0.0 }
  0xd5   :  { %v385_v16 = vpop.permute.xlu2 %384  ;;  %v486_v17 = vadd.f32 %v447_v51, %v446_v25  ;;  %v457_v25 = vsel %vm418_vm3, %v1453_v2, 0.0 }
  0xd6   :  { %vm422_vm12 = vcmp.eq.s32.totalorder %v1958_v15, %v385_v16  ;;  %vm423_vm13 = vcmp.eq.s32.totalorder %v1966_v11, %v385_v16  ;;  %vm424_vm14 = vcmp.eq.s32.totalorder %v1969_v27, %v385_v16 }
  0xd7   :  { %v373_v24 = vpop.permute.xlu1 %372  ;;  %v461_v20 = vsel %vm422_vm12, %v1511_v34, 0.0  ;;  %v462_v21 = vsel %vm423_vm13, %v1513_v35, 0.0  ;;  %v463_v42 = vsel %vm424_vm14, %v1525_v41, 0.0  ;;  %v487_v57 = vadd.f32 %v486_v17, %v448_v53 }
  0xd8   :  { %vm410_vm15 = vcmp.eq.s32.totalorder %v1958_v15, %v373_v24  ;;  %vm411_vm1 = vcmp.eq.s32.totalorder %v1966_v11, %v373_v24  ;;  %v506_v31 = vadd.f32 %v462_v21, %v461_v20  ;;  %vm412_vm2 = vcmp.eq.s32.totalorder %v1969_v27, %v373_v24 }
  0xd9   :  { %v449_v58 = vsel %vm410_vm15, %v1457_v4, 0.0  ;;  %v450_v60 = vsel %vm411_vm1, %v1459_v5, 0.0  ;;  %v456_v34 = vsel %vm417_vm11, %v1451_v1, 0.0  ;;  %v451_v35 = vsel %vm412_vm2, %v1461_v6, 0.0  ;;  %488 = vadd.xlane.f32.xlu0 %v487_v57  ;;  %v355_v57 = vld [vmem:[#allocation5 + $0x18] sm:$0xff] }
  0xda   :  { %v507_v43 = vadd.f32 %v506_v31, %v463_v42  ;;  %v490_v26 = vadd.f32 %v450_v60, %v449_v58  ;;  %v391_v38 = vpop.permute.xlu0 %390  ;;  %v498_v5 = vadd.f32 %v456_v34, %v455_v28  ;;  %v198_v60 = vld [vmem:[%s2316_s1 + $0x60] sm:$0xff]  ;;  %v358_v34 = vld [vmem:[#allocation5 + $0x30] sm:$0xff] }
  0xdb   :  { %vm428_vm7 = vcmp.eq.s32.totalorder %v1958_v15, %v391_v38  ;;  %vm429_vm11 = vcmp.eq.s32.totalorder %v1966_v11, %v391_v38  ;;  %vm430_vm12 = vcmp.eq.s32.totalorder %v1969_v27, %v391_v38  ;;  %v353_v28 = vld [vmem:[#allocation5 + $0x8] sm:$0xff]  ;;  %v354_v38 = vld [vmem:[#allocation5 + $0x10] sm:$0xff] }
  0xdc   :  { %508 = vadd.xlane.f32.xlu1 %v507_v43  ;;  %v491_v4 = vadd.f32 %v490_v26, %v451_v35  ;;  %v468_v51 = vsel %vm429_vm11, %v1504_v30, 0.0  ;;  %v469_v2 = vsel %vm430_vm12, %v1517_v37, 0.0 }
  0xdd   :  { %v394_v41 = vpop.permute.xlu2 %393 }
  0xde   :  { %492 = vadd.xlane.f32.xlu2 %v491_v4  ;;  %vm431_vm4 = vcmp.eq.s32.totalorder %v1958_v15, %v394_v41  ;;  %vm432_vm5 = vcmp.eq.s32.totalorder %v1966_v11, %v394_v41  ;;  %vm433_vm6 = vcmp.eq.s32.totalorder %v1969_v27, %v394_v41 }
  0xdf   :  { %v382_v0 = vpop.permute.xlu1 %381  ;;  %v470_v1 = vsel %vm431_vm4, %v1538_v49, 0.0  ;;  %v471_v6 = vsel %vm432_vm5, %v1540_v50, 0.0  ;;  %v472_v10 = vsel %vm433_vm6, %v1552_v56, 0.0  ;;  %v467_v50 = vsel %vm428_vm7, %v1502_v29, 0.0 }
  0xe0   :  { %vm419_vm8 = vcmp.eq.s32.totalorder %v1958_v15, %v382_v0  ;;  %vm420_vm9 = vcmp.eq.s32.totalorder %v1966_v11, %v382_v0  ;;  %v518_v8 = vadd.f32 %v471_v6, %v470_v1  ;;  %vm421_vm10 = vcmp.eq.s32.totalorder %v1969_v27, %v382_v0  ;;  %v361_v6 = vld [vmem:[#allocation5 + $0x48] sm:$0xff] }
  0xe1   :  { %v458_v9 = vsel %vm419_vm8, %v1474_v13, 0.0  ;;  %v459_v36 = vsel %vm420_vm9, %v1476_v14, 0.0  ;;  %v460_v49 = vsel %vm421_vm10, %v1490_v22, 0.0  ;;  %v499_v13 = vadd.f32 %v498_v5, %v457_v25 }
  0xe2   :  { %v519_v46 = vadd.f32 %v518_v8, %v472_v10  ;;  %v502_v7 = vadd.f32 %v459_v36, %v458_v9  ;;  %v400_v56 = vpop.permute.xlu0 %399  ;;  %v514_v17 = vadd.f32 %v468_v51, %v467_v50  ;;  %v356_v8 = vld [vmem:[#allocation5 + $0x20] sm:$0xff]  ;;  %v357_v10 = vld [vmem:[#allocation5 + $0x28] sm:$0xff]  ;;  %v359_v50 = vld [vmem:[#allocation5 + $0x38] sm:$0xff] }
  0xe3   :  { %vm437_vm1 = vcmp.eq.s32.totalorder %v1958_v15, %v400_v56  ;;  %vm438_vm2 = vcmp.eq.s32.totalorder %v1966_v11, %v400_v56  ;;  %vm439_vm3 = vcmp.eq.s32.totalorder %v1969_v27, %v400_v56  ;;  %v360_v51 = vld [vmem:[#allocation5 + $0x40] sm:$0xff] }
  0xe4   :  { %520 = vadd.xlane.f32.xlu1 %v519_v46  ;;  %v503_v16 = vadd.f32 %v502_v7, %v460_v49  ;;  %v515_v24 = vadd.f32 %v514_v17, %v469_v2  ;;  %v476_v20 = vsel %vm437_vm1, %v1529_v44, 0.0  ;;  %v477_v21 = vsel %vm438_vm2, %v1531_v45, 0.0  ;;  %v362_v17 = vld [vmem:[#allocation5 + $0x50] sm:$0xff]  ;;  %v363_v2 = vld [vmem:[#allocation5 + $0x58] sm:$0xff] }
  0xe5   :  { %v526_v37 = vadd.f32 %v477_v21, %v476_v20  ;;  %v2369_v21 = vld [vmem:[#allocation10_spill] sm:$0xff] }
  0xe6   :  { %500 = vadd.xlane.f32.xlu2 %v499_v13  ;;  %504 = vadd.xlane.f32.xlu0 %v503_v16 }
  0xe7   :  { %v388_v14 = vpop.permute.xlu1 %387 }
  0xe8   :  { %vm425_vm13 = vcmp.eq.s32.totalorder %v1958_v15, %v388_v14  ;;  %vm426_vm14 = vcmp.eq.s32.totalorder %v1966_v11, %v388_v14  ;;  %vm427_vm15 = vcmp.eq.s32.totalorder %v1969_v27, %v388_v14 }
  0xe9   :  { %v464_v22 = vsel %vm425_vm13, %v1507_v32, 0.0  ;;  %v465_v29 = vsel %vm426_vm14, %v1509_v33, 0.0  ;;  %v466_v55 = vsel %vm427_vm15, %v1521_v39, 0.0  ;;  %v478_v33 = vsel %vm439_vm3, %v1544_v52, 0.0 }
  0xea   :  { %v510_v30 = vadd.f32 %v465_v29, %v464_v22  ;;  %v527_v58 = vadd.f32 %v526_v37, %v478_v33  ;;  %v2370_v33 = vld [vmem:[#allocation11_spill] sm:$0xff] }
  0xec   :  { %v511_v53 = vadd.f32 %v510_v30, %v466_v55 }
  0xee   :  { %512 = vadd.xlane.f32.xlu2 %v511_v53  ;;  %516 = vadd.xlane.f32.xlu0 %v515_v24  ;;  %v2368_v53 = vld [vmem:[#allocation9_spill] sm:$0xff] }
  0xef   :  { %v397_v32 = vpop.permute.xlu1 %396 }
  0xf0   :  { %vm434_vm4 = vcmp.eq.s32.totalorder %v1958_v15, %v397_v32  ;;  %vm435_vm5 = vcmp.eq.s32.totalorder %v1966_v11, %v397_v32  ;;  %vm436_vm6 = vcmp.eq.s32.totalorder %v1969_v27, %v397_v32 }
  0xf1   :  { %v473_v39 = vsel %vm434_vm4, %v1534_v47, 0.0  ;;  %v474_v44 = vsel %vm435_vm5, %v1536_v48, 0.0  ;;  %v475_v45 = vsel %vm436_vm6, %v1548_v54, 0.0  ;;  %v2367_v47 = vld [vmem:[#allocation28_spill] sm:$0xff]  ;;  %v352_v48 = vld [vmem:[#allocation5] sm:$0xff] }
  0xf2   :  { %v522_v31 = vadd.f32 %v474_v44, %v473_v39 }
  0xf4   :  { %v523_v42 = vadd.f32 %v522_v31, %v475_v45 }
  0xf6   :  { %524 = vadd.xlane.f32.xlu2 %v523_v42  ;;  %528 = vadd.xlane.f32.xlu0 %v527_v58 }
 0x10a   :  { %687 = vperm.xlu0 %1226, %v1954_v62  }
 0x10e   :  { %402 = vperm.xlu2 %1225, %v198_v60  }
 0x112   :  { %637 = vperm.xlu0 %1226, %v1796_v59  }
 0x116   :  { %627 = vperm.xlu2 %1225, %v1803_v63  }
 0x11a   :  { %652 = vperm.xlu0 %1226, %v1822_v18  }
 0x11e   :  { %642 = vperm.xlu2 %1225, %v1827_v23  }
 0x122   :  { %667 = vperm.xlu0 %1226, %v1851_v40  }
 0x126   :  { %657 = vperm.xlu2 %1225, %v1932_v3  }
 0x12a   :  { %682 = vperm.xlu0 %1226, %v1877_v19  }
 0x12e   :  { %672 = vperm.xlu2 %1225, %v2367_v47  }
 0x137   :  { %v485_v52 = vpop.xlane.xlu1 %484 }
 0x138   :  { %v534_v54 = vadd.f32 %v485_v52, %v352_v48  ;;  %v1358_v48 = vld [vmem:[#allocation6 + $0x30] sm:$0xff] }
 0x13a   :  { %547 = vst.msk [vmem:[#allocation5] sm:$0xff] %vm64_vm0, %v534_v54  ;;  %v1359_v54 = vld [vmem:[#allocation6 + $0x38] sm:$0xff] }
 0x13f   :  { %v497_v43 = vpop.xlane.xlu1 %496 }
 0x140   :  { %v537_v26 = vadd.f32 %v497_v43, %v355_v57  ;;  %v1360_v43 = vld [vmem:[#allocation6 + $0x40] sm:$0xff] }
 0x142   :  { %550 = vst.msk [vmem:[#allocation5 + $0x18] sm:$0xff] %vm64_vm0, %v537_v26 }
 0x14c   :  { %v489_v35 = vpop.xlane.xlu0 %488 }
 0x14d   :  { %v535_v41 = vadd.f32 %v489_v35, %v353_v28 }
 0x14f   :  { %v509_v4 = vpop.xlane.xlu1 %508  ;;  %548 = vst.msk [vmem:[#allocation5 + $0x8] sm:$0xff] %vm64_vm0, %v535_v41 }
 0x150   :  { %v540_v5 = vadd.f32 %v509_v4, %v358_v34 }
 0x151   :  { %v493_v0 = vpop.xlane.xlu2 %492 }
 0x152   :  { %v536_v1 = vadd.f32 %v493_v0, %v354_v38  ;;  %553 = vst.msk [vmem:[#allocation5 + $0x30] sm:$0xff] %vm64_vm0, %v540_v5 }
 0x154   :  { %549 = vst.msk [vmem:[#allocation5 + $0x10] sm:$0xff] %vm64_vm0, %v536_v1 }
 0x157   :  { %v521_v9 = vpop.xlane.xlu1 %520 }
 0x158   :  { %v543_v36 = vadd.f32 %v521_v9, %v361_v6  ;;  %v1361_v6 = vld [vmem:[#allocation6 + $0x78] sm:$0xff]  ;;  %v1362_v9 = vld [vmem:[#allocation6 + $0x80] sm:$0xff] }
 0x159   :  { %v501_v46 = vpop.xlane.xlu2 %500  ;;  %v505_v7 = vpop.xlane.xlu0 %504 }
 0x15a   :  { %v538_v25 = vadd.f32 %v501_v46, %v356_v8  ;;  %556 = vst.msk [vmem:[#allocation5 + $0x48] sm:$0xff] %vm64_vm0, %v543_v36  ;;  %v539_v49 = vadd.f32 %v505_v7, %v357_v10  ;;  %v1363_v36 = vld [vmem:[#allocation6 + $0x88] sm:$0xff] }
 0x15c   :  { %551 = vst.msk [vmem:[#allocation5 + $0x20] sm:$0xff] %vm64_vm0, %v538_v25 }
 0x15d   :  { %552 = vst.msk [vmem:[#allocation5 + $0x28] sm:$0xff] %vm64_vm0, %v539_v49 }
 0x161   :  { %v513_v13 = vpop.xlane.xlu2 %512  ;;  %v517_v16 = vpop.xlane.xlu0 %516 }
 0x162   :  { %v541_v56 = vadd.f32 %v513_v13, %v359_v50  ;;  %v542_v14 = vadd.f32 %v517_v16, %v360_v51  ;;  %v2371_v13 = vld [vmem:[#allocation19_spill] sm:$0xff] }
 0x164   :  { %554 = vst.msk [vmem:[#allocation5 + $0x38] sm:$0xff] %vm64_vm0, %v541_v56 }
 0x165   :  { %555 = vst.msk [vmem:[#allocation5 + $0x40] sm:$0xff] %vm64_vm0, %v542_v14 }
 0x169   :  { %v525_v22 = vpop.xlane.xlu2 %524  ;;  %v529_v29 = vpop.xlane.xlu0 %528 }
 0x16a   :  { %v544_v30 = vadd.f32 %v525_v22, %v362_v17  ;;  %v545_v55 = vadd.f32 %v529_v29, %v363_v2  ;;  %v1364_v2 = vld [vmem:[#allocation6 + $0xc0] sm:$0xff]  ;;  %v1365_v29 = vld [vmem:[#allocation6 + $0xc8] sm:$0xff] }
 0x16c   :  { %557 = vst.msk [vmem:[#allocation5 + $0x50] sm:$0xff] %vm64_vm0, %v544_v30 }
 0x16d   :  { %558 = vst.msk [vmem:[#allocation5 + $0x58] sm:$0xff] %vm64_vm0, %v545_v55  ;;  %v1366_v55 = vld [vmem:[#allocation6 + $0xd0] sm:$0xff] }
 0x171   :  { %v403_v24 = vpop.permute.xlu2 %402 }
 0x172   :  { %vm440_vm7 = vcmp.eq.s32.totalorder %v1958_v15, %v403_v24  ;;  %vm441_vm8 = vcmp.eq.s32.totalorder %v1966_v11, %v403_v24  ;;  %vm442_vm9 = vcmp.eq.s32.totalorder %v1969_v27, %v403_v24 }
 0x173   :  { %v479_v20 = vsel %vm440_vm7, %v2368_v53, 0.0  ;;  %v480_v32 = vsel %vm441_vm8, %v2369_v21, 0.0  ;;  %v481_v39 = vsel %vm442_vm9, %v2370_v33, 0.0 }
 0x174   :  { %v530_v37 = vadd.f32 %v480_v32, %v479_v20 }
 0x176   :  { %v531_v44 = vadd.f32 %v530_v37, %v481_v39 }
 0x178   :  { %532 = vadd.xlane.f32.xlu1 %v531_v44 }
 0x17c   :  { %v688_v31 = vpop.permute.xlu0 %687 }
 0x17d   :  { %v726_v45 = vsub.f32 %v2368_v53, %v688_v31  ;;  %v727_v58 = vsub.f32 %v2369_v21, %v688_v31  ;;  %v728_v15 = vsub.f32 %v2370_v33, %v688_v31  ;;  %v2372_v33 = vld [vmem:[#allocation15_spill] sm:$0xff] }
 0x17f   :  { %v801_v42 = vmul.f32 1.442695, %v726_v45  ;;  %v803_v11 = vmul.f32 1.442695, %v727_v58  ;;  %v805_v60 = vmul.f32 1.442695, %v728_v15 }
 0x180   :  { %v1367_v58 = vld [vmem:[#allocation6 + $0x108] sm:$0xff] }
 0x181   :  { %1228 = vpow2.f32 %v801_v42  ;;  %v1368_v42 = vld [vmem:[#allocation6 + $0x110] sm:$0xff] }
 0x182   :  { %1230 = vpow2.f32 %v803_v11 }
 0x183   :  { %1232 = vpow2.f32 %v805_v60  ;;  %v1369_v60 = vld [vmem:[#allocation6 + $0x118] sm:$0xff] }
 0x184   :  { %v638_v27 = vpop.permute.xlu0 %637 }
 0x185   :  { %v696_v52 = vsub.f32 %v1358_v48, %v638_v27  ;;  %v697_v57 = vsub.f32 %v1359_v54, %v638_v27  ;;  %v698_v26 = vsub.f32 %v1360_v43, %v638_v27 }
 0x187   :  { %v1229_v28 = vpop.eup %1228  ;;  %v741_v34 = vmul.f32 1.442695, %v696_v52  ;;  %v743_v35 = vmul.f32 1.442695, %v697_v57  ;;  %v745_v4 = vmul.f32 1.442695, %v698_v26 }
 0x188   :  { %v1231_v38 = vpop.eup %1230  ;;  %v2373_v26 = vld [vmem:[#allocation22_spill] sm:$0xff] }
 0x189   :  { %1234 = vpow2.f32 %v741_v34  ;;  %v855_v41 = vadd.f32 %v1231_v38, %v1229_v28  ;;  %v1233_v5 = vpop.eup %1232 }
 0x18a   :  { %1236 = vpow2.f32 %v743_v35 }
 0x18b   :  { %v856_v0 = vadd.f32 %v1233_v5, %v855_v41  ;;  %1238 = vpow2.f32 %v745_v4  ;;  %v2374_v41 = vld [vmem:[#allocation25_spill] sm:$0xff] }
 0x18c   :  { %v653_v1 = vpop.permute.xlu0 %652 }
 0x18d   :  { %v705_v8 = vsub.f32 %v1361_v6, %v653_v1  ;;  %v706_v10 = vsub.f32 %v1362_v9, %v653_v1  ;;  %v707_v46 = vsub.f32 %v1363_v36, %v653_v1  ;;  %857 = vadd.xlane.f32.xlu2 %v856_v0  ;;  %v628_v6 = vpop.permute.xlu2 %627 }
 0x18f   :  { %v1235_v7 = vpop.eup %1234  ;;  %v759_v25 = vmul.f32 1.442695, %v705_v8  ;;  %v761_v49 = vmul.f32 1.442695, %v706_v10  ;;  %v763_v51 = vmul.f32 1.442695, %v707_v46 }
 0x190   :  { %v1237_v50 = vpop.eup %1236  ;;  %v1370_v8 = vld [vmem:[#allocation6] sm:$0xff]  ;;  %v1371_v10 = vld [vmem:[#allocation6 + $0x8] sm:$0xff] }
 0x191   :  { %1240 = vpow2.f32 %v759_v25  ;;  %632 = vperm.xlu1 %1227, %v2371_v13   ;;  %v815_v16 = vadd.f32 %v1237_v50, %v1235_v7  ;;  %v1239_v56 = vpop.eup %1238  ;;  %v690_v9 = vsub.f32 %v1370_v8, %v628_v6  ;;  %v691_v36 = vsub.f32 %v1371_v10, %v628_v6 }
 0x192   :  { %1242 = vpow2.f32 %v761_v49  ;;  %v1372_v49 = vld [vmem:[#allocation6 + $0x10] sm:$0xff] }
 0x193   :  { %v816_v14 = vadd.f32 %v1239_v56, %v815_v16  ;;  %1244 = vpow2.f32 %v763_v51  ;;  %v729_v7 = vmul.f32 1.442695, %v690_v9  ;;  %v731_v25 = vmul.f32 1.442695, %v691_v36  ;;  %v1373_v51 = vld [vmem:[#allocation6 + $0x48] sm:$0xff]  ;;  %v1374_v56 = vld [vmem:[#allocation6 + $0x50] sm:$0xff] }
 0x194   :  { %v668_v17 = vpop.permute.xlu0 %667  ;;  %v692_v50 = vsub.f32 %v1372_v49, %v628_v6  ;;  %v1381_v6 = vld [vmem:[#allocation6 + $0xe8] sm:$0xff] }
 0x195   :  { %v714_v22 = vsub.f32 %v1364_v2, %v668_v17  ;;  %v715_v30 = vsub.f32 %v1365_v29, %v668_v17  ;;  %v716_v24 = vsub.f32 %v1366_v55, %v668_v17  ;;  %817 = vadd.xlane.f32.xlu2 %v816_v14  ;;  %v643_v46 = vpop.permute.xlu2 %642 }
 0x196   :  { %v699_v16 = vsub.f32 %v1373_v51, %v643_v46  ;;  %v700_v14 = vsub.f32 %v1374_v56, %v643_v46  ;;  %v733_v17 = vmul.f32 1.442695, %v692_v50  ;;  %v364_v51 = vld [vmem:[#allocation5 + $0x60] sm:$0xff] }
 0x197   :  { %v1241_v53 = vpop.eup %1240  ;;  %v777_v20 = vmul.f32 1.442695, %v714_v22  ;;  %v779_v21 = vmul.f32 1.442695, %v715_v30  ;;  %v781_v37 = vmul.f32 1.442695, %v716_v24 }
 0x198   :  { %v1243_v32 = vpop.eup %1242  ;;  %v747_v22 = vmul.f32 1.442695, %v699_v16  ;;  %v749_v29 = vmul.f32 1.442695, %v700_v14  ;;  %v1375_v24 = vld [vmem:[#allocation6 + $0x58] sm:$0xff] }
 0x199   :  { %1246 = vpow2.f32 %v777_v20  ;;  %647 = vperm.xlu1 %1227, %v2372_v33   ;;  %v827_v39 = vadd.f32 %v1243_v32, %v1241_v53  ;;  %v1245_v44 = vpop.eup %1244  ;;  %v701_v53 = vsub.f32 %v1375_v24, %v643_v46  ;;  %v1376_v20 = vld [vmem:[#allocation6 + $0x90] sm:$0xff]  ;;  %v1377_v32 = vld [vmem:[#allocation6 + $0x98] sm:$0xff]  ;;  %v871_v24 = vld [vmem:[#allocation3 + $0x60] sm:$0xff] }
 0x19a   :  { %1248 = vpow2.f32 %v779_v21 }
 0x19b   :  { %v828_v31 = vadd.f32 %v1245_v44, %v827_v39  ;;  %1250 = vpow2.f32 %v781_v37  ;;  %v751_v44 = vmul.f32 1.442695, %v701_v53  ;;  %v2376_v53 = vld [vmem:[#allocation16_spill] sm:$0xff] }
 0x19c   :  { %v683_v45 = vpop.permute.xlu0 %682 }
 0x19d   :  { %v723_v15 = vsub.f32 %v1367_v58, %v683_v45  ;;  %v724_v11 = vsub.f32 %v1368_v42, %v683_v45  ;;  %v725_v27 = vsub.f32 %v1369_v60, %v683_v45  ;;  %829 = vadd.xlane.f32.xlu2 %v828_v31  ;;  %v658_v2 = vpop.permute.xlu2 %657 }
 0x19e   :  { %v708_v21 = vsub.f32 %v1376_v20, %v658_v2  ;;  %v709_v37 = vsub.f32 %v1377_v32, %v658_v2  ;;  %v591_v20 = vsub.f32 %v2376_v53, %v1822_v18 }
 0x19f   :  { %v1247_v48 = vpop.eup %1246  ;;  %v795_v52 = vmul.f32 1.442695, %v723_v15  ;;  %v797_v54 = vmul.f32 1.442695, %v724_v11  ;;  %v799_v43 = vmul.f32 1.442695, %v725_v27 }
 0x1a0   :  { %v1249_v57 = vpop.eup %1248  ;;  %v765_v31 = vmul.f32 1.442695, %v708_v21  ;;  %v767_v58 = vmul.f32 1.442695, %v709_v37  ;;  %v1378_v27 = vld [vmem:[#allocation6 + $0xa0] sm:$0xff] }
 0x1a1   :  { %1252 = vpow2.f32 %v795_v52  ;;  %662 = vperm.xlu1 %1227, %v2373_v26   ;;  %v839_v28 = vadd.f32 %v1249_v57, %v1247_v48  ;;  %v1251_v34 = vpop.eup %1250  ;;  %v710_v48 = vsub.f32 %v1378_v27, %v658_v2  ;;  %v1379_v52 = vld [vmem:[#allocation6 + $0xd8] sm:$0xff]  ;;  %v1380_v57 = vld [vmem:[#allocation6 + $0xe0] sm:$0xff]  ;;  %v609_v37 = vmul.f32 1.442695, %v591_v20  ;;  %v1388_v20 = vld [vmem:[#allocation6 + $0xa8] sm:$0xff] }
 0x1a2   :  { %1254 = vpow2.f32 %v797_v54 }
 0x1a3   :  { %v840_v35 = vadd.f32 %v1251_v34, %v839_v28  ;;  %1256 = vpow2.f32 %v799_v43  ;;  %v769_v34 = vmul.f32 1.442695, %v710_v48 }
 0x1a4   :  { %1258 = vpow2.f32 %v729_v7 }
 0x1a5   :  { %841 = vadd.xlane.f32.xlu2 %v840_v35  ;;  %1260 = vpow2.f32 %v731_v25  ;;  %v673_v15 = vpop.permute.xlu2 %672 }
 0x1a6   :  { %1262 = vpow2.f32 %v733_v17  ;;  %v717_v54 = vsub.f32 %v1379_v52, %v673_v15  ;;  %v718_v43 = vsub.f32 %v1380_v57, %v673_v15  ;;  %v719_v8 = vsub.f32 %v1381_v6, %v673_v15  ;;  %v864_v6 = vld [vmem:[#allocation3 + $0x28] sm:$0xff] }
 0x1a7   :  { %v1253_v38 = vpop.eup %1252  ;;  %1264 = vpow2.f32 %v747_v22  ;;  %v598_v17 = vsub.f32 %v1947_v12, %v1954_v62  ;;  %v2375_v22 = vld [vmem:[#allocation13_spill] sm:$0xff] }
 0x1a8   :  { %v1255_v4 = vpop.eup %1254  ;;  %1266 = vpow2.f32 %v749_v29  ;;  %v783_v35 = vmul.f32 1.442695, %v717_v54  ;;  %v787_v10 = vmul.f32 1.442695, %v719_v8  ;;  %v588_v29 = vsub.f32 %v2375_v22, %v1796_v59  ;;  %v2378_v8 = vld [vmem:[#allocation23_spill] sm:$0xff] }
 0x1a9   :  { %677 = vperm.xlu1 %1227, %v2374_v41   ;;  %v851_v5 = vadd.f32 %v1255_v4, %v1253_v38  ;;  %v1257_v0 = vpop.eup %1256  ;;  %1268 = vpow2.f32 %v751_v44  ;;  %v785_v4 = vmul.f32 1.442695, %v718_v43  ;;  %v623_v2 = vmul.f32 1.442695, %v598_v17  ;;  %v1382_v44 = vld [vmem:[#allocation6 + $0x18] sm:$0xff] }
 0x1aa   :  { %v1259_v30 = vpop.eup %1258  ;;  %1270 = vpow2.f32 %v765_v31 }
 0x1ab   :  { %v852_v1 = vadd.f32 %v1257_v0, %v851_v5  ;;  %v1261_v55 = vpop.eup %1260  ;;  %1272 = vpow2.f32 %v767_v58  ;;  %v1384_v58 = vld [vmem:[#allocation6 + $0x28] sm:$0xff] }
 0x1ac   :  { %v807_v39 = vadd.f32 %v1261_v55, %v1259_v30  ;;  %v1263_v45 = vpop.eup %1262  ;;  %1274 = vpow2.f32 %v769_v34  ;;  %v603_v30 = vmul.f32 1.442695, %v588_v29 }
 0x1ad   :  { %853 = vadd.xlane.f32.xlu2 %v852_v1  ;;  %v1265_v42 = vpop.eup %1264  ;;  %1276 = vpow2.f32 %v783_v35 }
 0x1ae   :  { %v808_v11 = vadd.f32 %v1263_v45, %v807_v39  ;;  %v1267_v60 = vpop.eup %1266  ;;  %1278 = vpow2.f32 %v785_v4  ;;  %v1383_v45 = vld [vmem:[#allocation6 + $0x20] sm:$0xff] }
 0x1af   :  { %v819_v28 = vadd.f32 %v1267_v60, %v1265_v42  ;;  %v1269_v38 = vpop.eup %1268  ;;  %1280 = vpow2.f32 %v787_v10  ;;  %v861_v42 = vld [vmem:[#allocation3 + $0x10] sm:$0xff]  ;;  %v995_v10 = vshrl.u32 %v344_v61, 7 }
 0x1b0   :  { %v1271_v5 = vpop.eup %1270  ;;  %1282 = vpow2.f32 %v623_v2 }
 0x1b1   :  { %v820_v0 = vadd.f32 %v1269_v38, %v819_v28  ;;  %v1273_v1 = vpop.eup %1272  ;;  %1284 = vpow2.f32 %v603_v30  ;;  %v1385_v38 = vld [vmem:[#allocation6 + $0x60] sm:$0xff]  ;;  %v1007_v2 = vadd.s32 96, %v995_v10 }
 0x1b2   :  { %v831_v9 = vadd.f32 %v1273_v1, %v1271_v5  ;;  %v1275_v36 = vpop.eup %1274  ;;  %1286 = vpow2.f32 %v609_v37  ;;  %v1386_v5 = vld [vmem:[#allocation6 + $0x68] sm:$0xff]  ;;  %v939_v30 = vld [vmem:[#allocation2 + $0x60] sm:$0xff] }
 0x1b3   :  { %v1277_v46 = vpop.eup %1276  ;;  %vm1034_vm10 = vcmp.lt.s32.totalorder %v1007_v2, 100 }
 0x1b4   :  { %v832_v7 = vadd.f32 %v1275_v36, %v831_v9  ;;  %v1279_v25 = vpop.eup %1278  ;;  %v597_v9 = vsub.f32 %v2378_v8, %v1877_v19 }
 0x1b5   :  { %v843_v49 = vadd.f32 %v1279_v25, %v1277_v46  ;;  %v1281_v50 = vpop.eup %1280 }
 0x1b6   :  { %v1283_v55 = vpop.eup %1282  ;;  %v621_v17 = vmul.f32 1.442695, %v597_v9 }
 0x1b7   :  { %v844_v16 = vadd.f32 %v1281_v50, %v843_v49  ;;  %v884_v21 = vmul.f32 %v1283_v55, %v871_v24  ;;  %v1285_v62 = vpop.eup %1284 }
 0x1b8   :  { %v874_v52 = vmul.f32 %v1285_v62, %v861_v42  ;;  %v1287_v34 = vpop.eup %1286  ;;  %v867_v62 = vld [vmem:[#allocation3 + $0x40] sm:$0xff] }
 0x1b9   :  { %v877_v50 = vmul.f32 %v1287_v34, %v864_v6  ;;  %v929_v6 = vld [vmem:[#allocation2 + $0x10] sm:$0xff] }
 0x1d3   :  { %809 = vadd.xlane.f32.xlu1 %v808_v11  ;;  %v2377_v11 = vld [vmem:[#allocation20_spill] sm:$0xff] }
 0x1d4   :  { %v594_v18 = vsub.f32 %v2377_v11, %v1851_v40 }
 0x1d6   :  { %v615_v43 = vmul.f32 1.442695, %v594_v18  ;;  %v1151_v18 = vld [vmem:[#allocation4 + $0x60] sm:$0xff] }
 0x1db   :  { %821 = vadd.xlane.f32.xlu1 %v820_v0  ;;  %v1387_v0 = vld [vmem:[#allocation6 + $0x70] sm:$0xff] }
 0x1e3   :  { %833 = vadd.xlane.f32.xlu1 %v832_v7 }
 0x1eb   :  { %v533_v56 = vpop.xlane.xlu1 %532  ;;  %845 = vadd.xlane.f32.xlu1 %v844_v16 }
 0x1ec   :  { %v546_v14 = vadd.f32 %v533_v56, %v364_v51 }
 0x1ee   :  { %559 = vst.msk [vmem:[#allocation5 + $0x60] sm:$0xff] %vm64_vm0, %v546_v14 }
 0x200   :  { %v858_v32 = vpop.xlane.xlu2 %857 }
 0x201   :  { %v897_v39 = vadd.f32 %v884_v21, %v858_v32  ;;  %v1389_v32 = vld [vmem:[#allocation6 + $0xb0] sm:$0xff] }
 0x203   :  { %910 = vst.msk [vmem:[#allocation3 + $0x60] sm:$0xff] %vm64_vm0, %v897_v39  ;;  %v633_v12 = vpop.permute.xlu1 %632  ;;  %v1390_v39 = vld [vmem:[#allocation6 + $0xb8] sm:$0xff] }
 0x204   :  { %v693_v31 = vsub.f32 %v1382_v44, %v633_v12  ;;  %v694_v59 = vsub.f32 %v1383_v45, %v633_v12  ;;  %v695_v15 = vsub.f32 %v1384_v58, %v633_v12  ;;  %v1060_v44 = vld [vmem:[#allocation5 + $0x60] sm:$0xff]  ;;  %v1047_v45 = vld [vmem:[%s2317_s2 + $0x60] sm:$0xff] }
 0x206   :  { %v735_v60 = vmul.f32 1.442695, %v693_v31  ;;  %v737_v27 = vmul.f32 1.442695, %v694_v59  ;;  %v739_v48 = vmul.f32 1.442695, %v695_v15 }
 0x208   :  { %1288 = vpow2.f32 %v735_v60  ;;  %v818_v54 = vpop.xlane.xlu2 %817 }
 0x209   :  { %1290 = vpow2.f32 %v737_v27  ;;  %v887_v57 = vadd.f32 %v874_v52, %v818_v54  ;;  %v1125_v54 = vld [vmem:[%s2318_s3 + $0x60] sm:$0xff] }
 0x20a   :  { %v952_v28 = vld [vmem:[#allocation3 + $0x60] sm:$0xff]  ;;  %1292 = vpow2.f32 %v739_v48 }
 0x20b   :  { %1294 = vlog2.f32 %v952_v28  ;;  %900 = vst.msk [vmem:[#allocation3 + $0x10] sm:$0xff] %vm64_vm0, %v887_v57  ;;  %v648_v35 = vpop.permute.xlu1 %647 }
 0x20c   :  { %v702_v4 = vsub.f32 %v1385_v38, %v648_v35  ;;  %v703_v40 = vsub.f32 %v1386_v5, %v648_v35  ;;  %v704_v1 = vsub.f32 %v1387_v0, %v648_v35  ;;  %1296 = vpow2.f32 %v615_v43 }
 0x20e   :  { %v1289_v36 = vpop.eup %1288  ;;  %v753_v46 = vmul.f32 1.442695, %v702_v4  ;;  %v755_v7 = vmul.f32 1.442695, %v703_v40  ;;  %v757_v25 = vmul.f32 1.442695, %v704_v1 }
 0x20f   :  { %v1291_v49 = vpop.eup %1290 }
 0x210   :  { %v1293_v51 = vpop.eup %1292  ;;  %1298 = vpow2.f32 %v753_v46  ;;  %v830_v16 = vpop.xlane.xlu2 %829  ;;  %v811_v56 = vadd.f32 %v1291_v49, %v1289_v36  ;;  %v1391_v36 = vld [vmem:[#allocation6 + $0xf0] sm:$0xff]  ;;  %v870_v49 = vld [vmem:[#allocation3 + $0x58] sm:$0xff] }
 0x211   :  { %v1295_v14 = vpop.eup %1294  ;;  %1300 = vpow2.f32 %v755_v7  ;;  %v890_v22 = vadd.f32 %v877_v50, %v830_v16  ;;  %v1392_v7 = vld [vmem:[#allocation6 + $0xf8] sm:$0xff]  ;;  %v1050_v50 = vld [vmem:[#allocation5 + $0x10] sm:$0xff]  ;;  %v1393_v16 = vld [vmem:[#allocation6 + $0x100] sm:$0xff] }
 0x212   :  { %v978_v29 = vmul.f32 0.6931472, %v1295_v14  ;;  %v942_v19 = vld [vmem:[#allocation3 + $0x10] sm:$0xff]  ;;  %1302 = vpow2.f32 %v757_v25  ;;  %v812_v61 = vadd.f32 %v1293_v51, %v811_v56  ;;  %v1297_v24 = vpop.eup %1296  ;;  %v1037_v51 = vld [vmem:[%s2317_s2 + $0x10] sm:$0xff] }
 0x213   :  { %1304 = vlog2.f32 %v942_v19  ;;  %903 = vst.msk [vmem:[#allocation3 + $0x28] sm:$0xff] %vm64_vm0, %v890_v22  ;;  %v663_v55 = vpop.permute.xlu1 %662  ;;  %v880_v27 = vmul.f32 %v1297_v24, %v867_v62 }
 0x214   :  { %v991_v53 = vadd.f32 %v978_v29, %v939_v30  ;;  %813 = vadd.xlane.f32.xlu0 %v812_v61  ;;  %v711_v21 = vsub.f32 %v1388_v20, %v663_v55  ;;  %v712_v37 = vsub.f32 %v1389_v32, %v663_v55  ;;  %v713_v12 = vsub.f32 %v1390_v39, %v663_v55  ;;  %v1141_v61 = vld [vmem:[#allocation4 + $0x10] sm:$0xff]  ;;  %v1115_v30 = vld [vmem:[%s2318_s3 + $0x10] sm:$0xff] }
 0x215   :  { %1306 = vpow2.f32 %v621_v17 }
 0x216   :  { %v1299_v31 = vpop.eup %1298  ;;  %v1073_v59 = vsub.f32 %v991_v53, %v1060_v44  ;;  %v1138_v58 = vmul.f32 384.0, %v991_v53  ;;  %v771_v15 = vmul.f32 1.442695, %v711_v21  ;;  %v773_v42 = vmul.f32 1.442695, %v712_v37 }
 0x217   :  { %v1301_v11 = vpop.eup %1300  ;;  %v775_v60 = vmul.f32 1.442695, %v713_v12 }
 0x218   :  { %v1303_v48 = vpop.eup %1302  ;;  %v1086_v52 = vsel %vm1034_vm10, %v1073_v59, 0.0  ;;  %v1164_v57 = vsub.f32 %v1138_v58, %v1151_v18  ;;  %1308 = vpow2.f32 %v771_v15  ;;  %v842_v43 = vpop.xlane.xlu2 %841  ;;  %v823_v28 = vadd.f32 %v1301_v11, %v1299_v31  ;;  %v1053_v15 = vld [vmem:[#allocation5 + $0x28] sm:$0xff] }
 0x219   :  { %v1305_v34 = vpop.eup %1304  ;;  %v1099_v35 = vadd.f32 %v1086_v52, %v1047_v45  ;;  %1310 = vpow2.f32 %v773_v42  ;;  %v893_v38 = vadd.f32 %v880_v27, %v842_v43  ;;  %v932_v45 = vld [vmem:[#allocation2 + $0x28] sm:$0xff] }
 0x21a   :  { %v1177_v4 = vsel %vm1034_vm10, %v1164_v57, 0.0  ;;  %v958_v5 = vmul.f32 0.6931472, %v1305_v34  ;;  %v945_v40 = vld [vmem:[#allocation3 + $0x28] sm:$0xff]  ;;  %1312 = vpow2.f32 %v775_v60  ;;  %v824_v0 = vadd.f32 %v1303_v48, %v823_v28  ;;  %v1040_v42 = vld [vmem:[%s2317_s2 + $0x28] sm:$0xff]  ;;  %v1144_v48 = vld [vmem:[#allocation4 + $0x28] sm:$0xff] }
 0x21b   :  { %v1307_v1 = vpop.eup %1306  ;;  %1112 = vst.msk [vmem:[%s2317_s2 + $0x60] sm:$0xff] %vm64_vm0, %v1099_v35  ;;  %v1190_v8 = vadd.f32 %v1177_v4, %v1125_v54  ;;  %1314 = vlog2.f32 %v945_v40  ;;  %v678_v9 = vpop.permute.xlu1 %677  ;;  %v1118_v52 = vld [vmem:[%s2318_s3 + $0x28] sm:$0xff]  ;;  %v935_v40 = vld [vmem:[#allocation2 + $0x40] sm:$0xff] }
 0x21c   :  { %v981_v10 = vadd.f32 %v958_v5, %v929_v6  ;;  %906 = vst.msk [vmem:[#allocation3 + $0x40] sm:$0xff] %vm64_vm0, %v893_v38  ;;  %825 = vadd.xlane.f32.xlu0 %v824_v0  ;;  %v720_v46 = vsub.f32 %v1391_v36, %v678_v9  ;;  %v721_v25 = vsub.f32 %v1392_v7, %v678_v9  ;;  %v1043_v6 = vld [vmem:[%s2317_s2 + $0x40] sm:$0xff] }
 0x21d   :  { %1203 = vst.msk [vmem:[%s2318_s3 + $0x60] sm:$0xff] %vm64_vm0, %v1190_v8  ;;  %v722_v56 = vsub.f32 %v1393_v16, %v678_v9  ;;  %v883_v24 = vmul.f32 %v1307_v1, %v870_v49  ;;  %v1056_v1 = vld [vmem:[#allocation5 + $0x40] sm:$0xff]  ;;  %v1121_v36 = vld [vmem:[%s2318_s3 + $0x40] sm:$0xff] }
 0x21e   :  { %v1309_v14 = vpop.eup %1308  ;;  %v1063_v17 = vsub.f32 %v981_v10, %v1050_v50  ;;  %v1128_v2 = vmul.f32 384.0, %v981_v10  ;;  %v789_v22 = vmul.f32 1.442695, %v720_v46  ;;  %v791_v29 = vmul.f32 1.442695, %v721_v25  ;;  %v1147_v10 = vld [vmem:[#allocation4 + $0x40] sm:$0xff] }
 0x21f   :  { %v1311_v19 = vpop.eup %1310  ;;  %v793_v55 = vmul.f32 1.442695, %v722_v56  ;;  %v938_v50 = vld [vmem:[#allocation2 + $0x58] sm:$0xff]  ;;  %v2379_v16 = vld [vmem:[#allocation14_spill] sm:$0xff] }
 0x220   :  { %v1313_v53 = vpop.eup %1312  ;;  %v1089_v20 = vadd.f32 %v1063_v17, %v1037_v51  ;;  %v1154_v21 = vsub.f32 %v1128_v2, %v1141_v61  ;;  %1316 = vpow2.f32 %v789_v22  ;;  %v854_v32 = vpop.xlane.xlu2 %853  ;;  %v835_v37 = vadd.f32 %v1311_v19, %v1309_v14  ;;  %v1059_v17 = vld [vmem:[#allocation5 + $0x58] sm:$0xff]  ;;  %v1046_v2 = vld [vmem:[%s2317_s2 + $0x58] sm:$0xff]  ;;  %v1150_v19 = vld [vmem:[#allocation4 + $0x58] sm:$0xff] }
 0x221   :  { %v1315_v39 = vpop.eup %1314  ;;  %1318 = vpow2.f32 %v791_v29  ;;  %v896_v12 = vadd.f32 %v883_v24, %v854_v32  ;;  %v586_v56 = vsub.f32 %v2379_v16, %v1803_v63  ;;  %v1124_v61 = vld [vmem:[%s2318_s3 + $0x58] sm:$0xff] }
 0x222   :  { %1102 = vst.msk [vmem:[%s2317_s2 + $0x10] sm:$0xff] %vm64_vm0, %v1089_v20  ;;  %v1180_v62 = vadd.f32 %v1154_v21, %v1115_v30  ;;  %v964_v44 = vmul.f32 0.6931472, %v1315_v39  ;;  %v836_v31 = vadd.f32 %v1313_v53, %v835_v37  ;;  %1320 = vpow2.f32 %v793_v55  ;;  %v2380_v53 = vld [vmem:[#allocation17_spill] sm:$0xff]  ;;  %v859_v37 = vld [vmem:[#allocation3] sm:$0xff]  ;;  %v2381_v39 = vld [vmem:[#allocation26_spill] sm:$0xff] }
 0x223   :  { %v948_v59 = vld [vmem:[#allocation3 + $0x40] sm:$0xff]  ;;  %909 = vst.msk [vmem:[#allocation3 + $0x58] sm:$0xff] %vm64_vm0, %v896_v12  ;;  %v599_v30 = vmul.f32 1.442695, %v586_v56  ;;  %v589_v20 = vsub.f32 %v2380_v53, %v1827_v23  ;;  %v592_v12 = vsub.f32 %v2381_v39, %v1932_v3  ;;  %v930_v16 = vld [vmem:[#allocation2 + $0x18] sm:$0xff] }
 0x224   :  { %1193 = vst.msk [vmem:[%s2318_s3 + $0x10] sm:$0xff] %vm64_vm0, %v1180_v62  ;;  %v984_v58 = vadd.f32 %v964_v44, %v932_v45  ;;  %1322 = vlog2.f32 %v948_v59  ;;  %837 = vadd.xlane.f32.xlu0 %v836_v31  ;;  %v862_v59 = vld [vmem:[#allocation3 + $0x18] sm:$0xff] }
 0x225   :  { %v605_v21 = vmul.f32 1.442695, %v589_v20  ;;  %v611_v45 = vmul.f32 1.442695, %v592_v12  ;;  %v933_v20 = vld [vmem:[#allocation2 + $0x30] sm:$0xff] }
 0x226   :  { %v1317_v11 = vpop.eup %1316  ;;  %v1066_v18 = vsub.f32 %v984_v58, %v1053_v15  ;;  %v1131_v60 = vmul.f32 384.0, %v984_v58  ;;  %v2382_v58 = vld [vmem:[#allocation27_spill] sm:$0xff] }
 0x227   :  { %v1319_v27 = vpop.eup %1318  ;;  %v595_v15 = vsub.f32 %v2382_v58, %v2367_v47 }
 0x228   :  { %v1092_v54 = vadd.f32 %v1066_v18, %v1040_v42  ;;  %v1157_v57 = vsub.f32 %v1131_v60, %v1144_v48  ;;  %v847_v43 = vadd.f32 %v1319_v27, %v1317_v11  ;;  %v1321_v28 = vpop.eup %1320  ;;  %v865_v48 = vld [vmem:[#allocation3 + $0x30] sm:$0xff] }
 0x229   :  { %v617_v60 = vmul.f32 1.442695, %v595_v15  ;;  %v936_v15 = vld [vmem:[#allocation2 + $0x48] sm:$0xff] }
 0x22a   :  { %v1323_v34 = vpop.eup %1322  ;;  %1105 = vst.msk [vmem:[%s2317_s2 + $0x28] sm:$0xff] %vm64_vm0, %v1092_v54  ;;  %v1183_v35 = vadd.f32 %v1157_v57, %v1118_v52  ;;  %v951_v38 = vld [vmem:[#allocation3 + $0x58] sm:$0xff]  ;;  %v848_v4 = vadd.f32 %v1321_v28, %v847_v43 }
 0x22b   :  { %v970_v5 = vmul.f32 0.6931472, %v1323_v34  ;;  %1324 = vlog2.f32 %v951_v38 }
 0x22c   :  { %1196 = vst.msk [vmem:[%s2318_s3 + $0x28] sm:$0xff] %vm64_vm0, %v1183_v35  ;;  %849 = vadd.xlane.f32.xlu0 %v848_v4  ;;  %1326 = vpow2.f32 %v599_v30  ;;  %v927_v35 = vld [vmem:[#allocation2] sm:$0xff]  ;;  %v868_v4 = vld [vmem:[#allocation3 + $0x48] sm:$0xff] }
 0x22d   :  { %v987_v0 = vadd.f32 %v970_v5, %v935_v40  ;;  %1328 = vpow2.f32 %v605_v21  ;;  %v1048_v5 = vld [vmem:[#allocation5] sm:$0xff]  ;;  %v1035_v40 = vld [vmem:[%s2317_s2] sm:$0xff] }
 0x22e   :  { %1330 = vpow2.f32 %v611_v45 }
 0x22f   :  { %v1069_v8 = vsub.f32 %v987_v0, %v1056_v1  ;;  %v1134_v9 = vmul.f32 384.0, %v987_v0 }
 0x231   :  { %v1325_v46 = vpop.eup %1324  ;;  %v1095_v7 = vadd.f32 %v1069_v8, %v1043_v6  ;;  %v1160_v25 = vsub.f32 %v1134_v9, %v1147_v10  ;;  %v1139_v6 = vld [vmem:[#allocation4] sm:$0xff]  ;;  %v1113_v8 = vld [vmem:[%s2318_s3] sm:$0xff] }
 0x232   :  { %v976_v49 = vmul.f32 0.6931472, %v1325_v46  ;;  %v1327_v32 = vpop.eup %1326 }
 0x233   :  { %1108 = vst.msk [vmem:[%s2317_s2 + $0x40] sm:$0xff] %vm64_vm0, %v1095_v7  ;;  %v1186_v51 = vadd.f32 %v1160_v25, %v1121_v36  ;;  %v872_v62 = vmul.f32 %v1327_v32, %v859_v37  ;;  %v1329_v23 = vpop.eup %1328  ;;  %v1054_v32 = vld [vmem:[#allocation5 + $0x30] sm:$0xff]  ;;  %v1041_v37 = vld [vmem:[%s2317_s2 + $0x30] sm:$0xff] }
 0x234   :  { %v990_v14 = vadd.f32 %v976_v49, %v938_v50  ;;  %v875_v42 = vmul.f32 %v1329_v23, %v862_v59  ;;  %v1331_v3 = vpop.eup %1330 }
 0x235   :  { %1199 = vst.msk [vmem:[%s2318_s3 + $0x40] sm:$0xff] %vm64_vm0, %v1186_v51  ;;  %v878_v52 = vmul.f32 %v1331_v3, %v865_v48  ;;  %v2383_v3 = vld [vmem:[#allocation18_spill] sm:$0xff] }
 0x236   :  { %v1072_v22 = vsub.f32 %v990_v14, %v1059_v17  ;;  %v1137_v29 = vmul.f32 384.0, %v990_v14  ;;  %v1051_v14 = vld [vmem:[#allocation5 + $0x18] sm:$0xff]  ;;  %v1038_v17 = vld [vmem:[%s2317_s2 + $0x18] sm:$0xff]  ;;  %v587_v48 = vsub.f32 %v2383_v3, %v2371_v13 }
 0x237   :  { %v2384_v13 = vld [vmem:[#allocation12_spill] sm:$0xff] }
 0x238   :  { %v1098_v63 = vadd.f32 %v1072_v22, %v1046_v2  ;;  %v1163_v55 = vsub.f32 %v1137_v29, %v1150_v19  ;;  %v1142_v29 = vld [vmem:[#allocation4 + $0x18] sm:$0xff]  ;;  %v1116_v19 = vld [vmem:[%s2318_s3 + $0x18] sm:$0xff] }
 0x23a   :  { %1111 = vst.msk [vmem:[%s2317_s2 + $0x58] sm:$0xff] %vm64_vm0, %v1098_v63  ;;  %v1189_v24 = vadd.f32 %v1163_v55, %v1124_v61 }
 0x23c   :  { %1202 = vst.msk [vmem:[%s2318_s3 + $0x58] sm:$0xff] %vm64_vm0, %v1189_v24 }
 0x246   :  { %v810_v44 = vpop.xlane.xlu1 %809 }
 0x247   :  { %v885_v31 = vadd.f32 %v872_v62, %v810_v44  ;;  %v1145_v62 = vld [vmem:[#allocation4 + $0x30] sm:$0xff]  ;;  %v1119_v44 = vld [vmem:[%s2318_s3 + $0x30] sm:$0xff] }
 0x249   :  { %898 = vst.msk [vmem:[#allocation3] sm:$0xff] %vm64_vm0, %v885_v31 }
 0x24e   :  { %v822_v11 = vpop.xlane.xlu1 %821 }
 0x24f   :  { %v888_v18 = vadd.f32 %v875_v42, %v822_v11  ;;  %v1057_v11 = vld [vmem:[#allocation5 + $0x48] sm:$0xff] }
 0x250   :  { %v940_v27 = vld [vmem:[#allocation3] sm:$0xff] }
 0x251   :  { %1332 = vlog2.f32 %v940_v27  ;;  %901 = vst.msk [vmem:[#allocation3 + $0x18] sm:$0xff] %vm64_vm0, %v888_v18  ;;  %v1044_v18 = vld [vmem:[%s2317_s2 + $0x48] sm:$0xff] }
 0x252   :  { %1334 = vpow2.f32 %v617_v60 }
 0x256   :  { %v834_v54 = vpop.xlane.xlu1 %833 }
 0x257   :  { %v1333_v57 = vpop.eup %1332  ;;  %v891_v43 = vadd.f32 %v878_v52, %v834_v54  ;;  %v1148_v52 = vld [vmem:[#allocation4 + $0x48] sm:$0xff]  ;;  %v1122_v54 = vld [vmem:[%s2318_s3 + $0x48] sm:$0xff] }
 0x258   :  { %v954_v28 = vmul.f32 0.6931472, %v1333_v57  ;;  %v943_v34 = vld [vmem:[#allocation3 + $0x18] sm:$0xff]  ;;  %v1335_v47 = vpop.eup %1334 }
 0x259   :  { %1336 = vlog2.f32 %v943_v34  ;;  %904 = vst.msk [vmem:[#allocation3 + $0x30] sm:$0xff] %vm64_vm0, %v891_v43  ;;  %v881_v9 = vmul.f32 %v1335_v47, %v868_v4  ;;  %v601_v34 = vmul.f32 1.442695, %v587_v48  ;;  %v860_v4 = vld [vmem:[#allocation3 + $0x8] sm:$0xff] }
 0x25a   :  { %v979_v38 = vadd.f32 %v954_v28, %v927_v35  ;;  %v590_v35 = vsub.f32 %v2384_v13, %v2372_v33  ;;  %v1042_v13 = vld [vmem:[%s2317_s2 + $0x38] sm:$0xff] }
 0x25c   :  { %v1061_v0 = vsub.f32 %v979_v38, %v1048_v5  ;;  %v1126_v1 = vmul.f32 384.0, %v979_v38  ;;  %v607_v47 = vmul.f32 1.442695, %v590_v35  ;;  %v2385_v5 = vld [vmem:[#allocation21_spill] sm:$0xff] }
 0x25e   :  { %v1087_v10 = vadd.f32 %v1061_v0, %v1035_v40  ;;  %v1152_v36 = vsub.f32 %v1126_v1, %v1139_v6  ;;  %v846_v46 = vpop.xlane.xlu1 %845  ;;  %v593_v40 = vsub.f32 %v2385_v5, %v2373_v26 }
 0x25f   :  { %v1337_v7 = vpop.eup %1336  ;;  %v894_v25 = vadd.f32 %v881_v9, %v846_v46 }
 0x260   :  { %1100 = vst.msk [vmem:[%s2317_s2] sm:$0xff] %vm64_vm0, %v1087_v10  ;;  %v1178_v49 = vadd.f32 %v1152_v36, %v1113_v8  ;;  %v960_v50 = vmul.f32 0.6931472, %v1337_v7  ;;  %v946_v51 = vld [vmem:[#allocation3 + $0x30] sm:$0xff]  ;;  %v613_v8 = vmul.f32 1.442695, %v593_v40 }
 0x261   :  { %1338 = vlog2.f32 %v946_v51  ;;  %907 = vst.msk [vmem:[#allocation3 + $0x48] sm:$0xff] %vm64_vm0, %v894_v25  ;;  %v863_v10 = vld [vmem:[#allocation3 + $0x20] sm:$0xff]  ;;  %v2386_v36 = vld [vmem:[#allocation24_spill] sm:$0xff]  ;;  %v866_v51 = vld [vmem:[#allocation3 + $0x38] sm:$0xff] }
 0x262   :  { %1191 = vst.msk [vmem:[%s2318_s3] sm:$0xff] %vm64_vm0, %v1178_v49  ;;  %v982_v56 = vadd.f32 %v960_v50, %v930_v16  ;;  %v596_v33 = vsub.f32 %v2386_v36, %v2374_v41  ;;  %v1045_v36 = vld [vmem:[%s2317_s2 + $0x50] sm:$0xff] }
 0x264   :  { %v1064_v2 = vsub.f32 %v982_v56, %v1051_v14  ;;  %v1129_v22 = vmul.f32 384.0, %v982_v56  ;;  %v619_v49 = vmul.f32 1.442695, %v596_v33 }
 0x266   :  { %v1090_v61 = vadd.f32 %v1064_v2, %v1038_v17  ;;  %v1155_v30 = vsub.f32 %v1129_v22, %v1142_v29  ;;  %v928_v29 = vld [vmem:[#allocation2 + $0x8] sm:$0xff] }
 0x267   :  { %v1339_v63 = vpop.eup %1338 }
 0x268   :  { %1103 = vst.msk [vmem:[%s2317_s2 + $0x18] sm:$0xff] %vm64_vm0, %v1090_v61  ;;  %v1181_v55 = vadd.f32 %v1155_v30, %v1116_v19  ;;  %v966_v24 = vmul.f32 0.6931472, %v1339_v63  ;;  %v949_v53 = vld [vmem:[#allocation3 + $0x48] sm:$0xff]  ;;  %v869_v61 = vld [vmem:[#allocation3 + $0x50] sm:$0xff]  ;;  %v1049_v30 = vld [vmem:[#allocation5 + $0x8] sm:$0xff] }
 0x269   :  { %1340 = vlog2.f32 %v949_v53  ;;  %v1036_v63 = vld [vmem:[%s2317_s2 + $0x8] sm:$0xff]  ;;  %v1140_v53 = vld [vmem:[#allocation4 + $0x8] sm:$0xff] }
 0x26a   :  { %1194 = vst.msk [vmem:[%s2318_s3 + $0x18] sm:$0xff] %vm64_vm0, %v1181_v55  ;;  %v985_v21 = vadd.f32 %v966_v24, %v933_v20  ;;  %1342 = vpow2.f32 %v601_v34  ;;  %v1114_v20 = vld [vmem:[%s2318_s3 + $0x8] sm:$0xff]  ;;  %v1055_v34 = vld [vmem:[#allocation5 + $0x38] sm:$0xff] }
 0x26b   :  { %1344 = vpow2.f32 %v607_v47 }
 0x26c   :  { %v1067_v39 = vsub.f32 %v985_v21, %v1054_v32  ;;  %v1132_v12 = vmul.f32 384.0, %v985_v21  ;;  %1346 = vpow2.f32 %v613_v8  ;;  %v937_v8 = vld [vmem:[#allocation2 + $0x50] sm:$0xff] }
 0x26e   :  { %v1093_v31 = vadd.f32 %v1067_v39, %v1041_v37  ;;  %v1158_v45 = vsub.f32 %v1132_v12, %v1145_v62 }
 0x26f   :  { %v1341_v23 = vpop.eup %1340 }
 0x270   :  { %1106 = vst.msk [vmem:[%s2317_s2 + $0x30] sm:$0xff] %vm64_vm0, %v1093_v31  ;;  %v1184_v59 = vadd.f32 %v1158_v45, %v1119_v44  ;;  %v972_v58 = vmul.f32 0.6931472, %v1341_v23  ;;  %v1343_v38 = vpop.eup %1342  ;;  %v931_v23 = vld [vmem:[#allocation2 + $0x20] sm:$0xff] }
 0x271   :  { %v873_v0 = vmul.f32 %v1343_v38, %v860_v4  ;;  %v1345_v9 = vpop.eup %1344  ;;  %v1146_v38 = vld [vmem:[#allocation4 + $0x38] sm:$0xff]  ;;  %v1120_v4 = vld [vmem:[%s2318_s3 + $0x38] sm:$0xff] }
 0x272   :  { %1197 = vst.msk [vmem:[%s2318_s3 + $0x30] sm:$0xff] %vm64_vm0, %v1184_v59  ;;  %v988_v42 = vadd.f32 %v972_v58, %v936_v15  ;;  %v876_v46 = vmul.f32 %v1345_v9, %v863_v10  ;;  %v1347_v26 = vpop.eup %1346  ;;  %v1052_v58 = vld [vmem:[#allocation5 + $0x20] sm:$0xff]  ;;  %v1039_v15 = vld [vmem:[%s2317_s2 + $0x20] sm:$0xff]  ;;  %v1058_v10 = vld [vmem:[#allocation5 + $0x50] sm:$0xff] }
 0x273   :  { %v879_v16 = vmul.f32 %v1347_v26, %v866_v51 }
 0x274   :  { %v1070_v60 = vsub.f32 %v988_v42, %v1057_v11  ;;  %v1135_v27 = vmul.f32 384.0, %v988_v42 }
 0x276   :  { %v1096_v57 = vadd.f32 %v1070_v60, %v1044_v18  ;;  %v1161_v43 = vsub.f32 %v1135_v27, %v1148_v52  ;;  %v1143_v18 = vld [vmem:[#allocation4 + $0x20] sm:$0xff]  ;;  %v1117_v60 = vld [vmem:[%s2318_s3 + $0x20] sm:$0xff] }
 0x278   :  { %1109 = vst.msk [vmem:[%s2317_s2 + $0x48] sm:$0xff] %vm64_vm0, %v1096_v57  ;;  %v1187_v28 = vadd.f32 %v1161_v43, %v1122_v54  ;;  %v934_v43 = vld [vmem:[#allocation2 + $0x38] sm:$0xff] }
 0x27a   :  { %1200 = vst.msk [vmem:[%s2318_s3 + $0x48] sm:$0xff] %vm64_vm0, %v1187_v28 }
 0x287   :  { %v814_v1 = vpop.xlane.xlu0 %813 }
 0x288   :  { %v886_v6 = vadd.f32 %v873_v0, %v814_v1 }
 0x28a   :  { %899 = vst.msk [vmem:[#allocation3 + $0x8] sm:$0xff] %vm64_vm0, %v886_v6 }
 0x28f   :  { %v826_v7 = vpop.xlane.xlu0 %825 }
 0x290   :  { %v889_v25 = vadd.f32 %v876_v46, %v826_v7  ;;  %v1149_v7 = vld [vmem:[#allocation4 + $0x50] sm:$0xff] }
 0x291   :  { %v941_v50 = vld [vmem:[#allocation3 + $0x8] sm:$0xff] }
 0x292   :  { %1348 = vlog2.f32 %v941_v50  ;;  %902 = vst.msk [vmem:[#allocation3 + $0x20] sm:$0xff] %vm64_vm0, %v889_v25  ;;  %v1123_v25 = vld [vmem:[%s2318_s3 + $0x50] sm:$0xff] }
 0x293   :  { %1350 = vpow2.f32 %v619_v49 }
 0x297   :  { %v838_v56 = vpop.xlane.xlu0 %837 }
 0x298   :  { %v1349_v14 = vpop.eup %1348  ;;  %v892_v17 = vadd.f32 %v879_v16, %v838_v56 }
 0x299   :  { %v956_v2 = vmul.f32 0.6931472, %v1349_v14  ;;  %v944_v22 = vld [vmem:[#allocation3 + $0x20] sm:$0xff]  ;;  %v1351_v41 = vpop.eup %1350 }
 0x29a   :  { %1352 = vlog2.f32 %v944_v22  ;;  %905 = vst.msk [vmem:[#allocation3 + $0x38] sm:$0xff] %vm64_vm0, %v892_v17  ;;  %v882_v21 = vmul.f32 %v1351_v41, %v869_v61 }
 0x29b   :  { %v980_v19 = vadd.f32 %v956_v2, %v928_v29 }
 0x29d   :  { %v1062_v55 = vsub.f32 %v980_v19, %v1049_v30  ;;  %v1127_v24 = vmul.f32 384.0, %v980_v19 }
 0x29f   :  { %v1088_v32 = vadd.f32 %v1062_v55, %v1036_v63  ;;  %v1153_v37 = vsub.f32 %v1127_v24, %v1140_v53  ;;  %v850_v39 = vpop.xlane.xlu0 %849 }
 0x2a0   :  { %v1353_v12 = vpop.eup %1352  ;;  %v895_v62 = vadd.f32 %v882_v21, %v850_v39 }
 0x2a1   :  { %1101 = vst.msk [vmem:[%s2317_s2 + $0x8] sm:$0xff] %vm64_vm0, %v1088_v32  ;;  %v1179_v44 = vadd.f32 %v1153_v37, %v1114_v20  ;;  %v962_v31 = vmul.f32 0.6931472, %v1353_v12  ;;  %v947_v45 = vld [vmem:[#allocation3 + $0x38] sm:$0xff] }
 0x2a2   :  { %1354 = vlog2.f32 %v947_v45  ;;  %908 = vst.msk [vmem:[#allocation3 + $0x50] sm:$0xff] %vm64_vm0, %v895_v62 }
 0x2a3   :  { %1192 = vst.msk [vmem:[%s2318_s3 + $0x8] sm:$0xff] %vm64_vm0, %v1179_v44  ;;  %v983_v59 = vadd.f32 %v962_v31, %v931_v23 }
 0x2a5   :  { %v1065_v42 = vsub.f32 %v983_v59, %v1052_v58  ;;  %v1130_v11 = vmul.f32 384.0, %v983_v59 }
 0x2a7   :  { %v1091_v27 = vadd.f32 %v1065_v42, %v1039_v15  ;;  %v1156_v3 = vsub.f32 %v1130_v11, %v1143_v18 }
 0x2a8   :  { %v1355_v48 = vpop.eup %1354 }
 0x2a9   :  { %1104 = vst.msk [vmem:[%s2317_s2 + $0x20] sm:$0xff] %vm64_vm0, %v1091_v27  ;;  %v1182_v52 = vadd.f32 %v1156_v3, %v1117_v60  ;;  %v968_v54 = vmul.f32 0.6931472, %v1355_v48  ;;  %v950_v57 = vld [vmem:[#allocation3 + $0x50] sm:$0xff] }
 0x2aa   :  { %1356 = vlog2.f32 %v950_v57 }
 0x2ab   :  { %1195 = vst.msk [vmem:[%s2318_s3 + $0x20] sm:$0xff] %vm64_vm0, %v1182_v52  ;;  %v986_v28 = vadd.f32 %v968_v54, %v934_v43 }
 0x2ad   :  { %v1068_v35 = vsub.f32 %v986_v28, %v1055_v34  ;;  %v1133_v47 = vmul.f32 384.0, %v986_v28 }
 0x2af   :  { %v1094_v5 = vadd.f32 %v1068_v35, %v1042_v13  ;;  %v1159_v40 = vsub.f32 %v1133_v47, %v1146_v38 }
 0x2b0   :  { %v1357_v0 = vpop.eup %1356 }
 0x2b1   :  { %1107 = vst.msk [vmem:[%s2317_s2 + $0x38] sm:$0xff] %vm64_vm0, %v1094_v5  ;;  %v1185_v1 = vadd.f32 %v1159_v40, %v1120_v4  ;;  %v974_v6 = vmul.f32 0.6931472, %v1357_v0 }
 0x2b3   :  { %1198 = vst.msk [vmem:[%s2318_s3 + $0x38] sm:$0xff] %vm64_vm0, %v1185_v1  ;;  %v989_v9 = vadd.f32 %v974_v6, %v937_v8 }
 0x2b5   :  { %v1071_v33 = vsub.f32 %v989_v9, %v1058_v10  ;;  %v1136_v46 = vmul.f32 384.0, %v989_v9 }
 0x2b7   :  { %v1097_v49 = vadd.f32 %v1071_v33, %v1045_v36  ;;  %v1162_v50 = vsub.f32 %v1136_v46, %v1149_v7 }
 0x2b9   :  { %1110 = vst.msk [vmem:[%s2317_s2 + $0x50] sm:$0xff] %vm64_vm0, %v1097_v49  ;;  %v1188_v26 = vadd.f32 %v1162_v50, %v1123_v25 }
 0x2bb   :  { %1201 = vst.msk [vmem:[%s2318_s3 + $0x50] sm:$0xff] %vm64_vm0, %v1188_v26 }
 0x2bc   :  { %1212 = vsyncpa [#allocation7], 1 }

</bundles_post_ra>
